<compile_context>
chip_gen: v6e
topology: v6e:2x2x1
jax: 0.10.0
libtpu: 0.0.40
codegen_flags: <defaults>
</compile_context>

<pallas_src>
import jax
import jax.numpy as jnp
from jax.experimental import pallas as pl
from jax.experimental.pallas import tpu as pltpu


def _round_up(x, m):
    return (x + m - 1) // m * m


def _pick_tk(d_in, max_tk):
    """Largest multiple of 128 that divides d_in (capped at max_tk).

    Falls back to padding d_in up to a tile multiple only when d_in has no
    usable 128-aligned divisor (rare; avoids streaming zero-padded We rows in
    the common case)."""
    best = None
    t = 128
    limit = min(max_tk, d_in)
    while t <= limit:
        if d_in % t == 0:
            best = t
        t += 128
    if best is not None:
        return best, d_in
    tk = min(max_tk, _round_up(d_in, 128))
    return tk, _round_up(d_in, tk)


def _device_kind():
    try:
        return jax.devices()[0].device_kind.lower()
    except Exception:
        return ""


def simclr_kernel(x_ref, we_ref, be_ref, w1_ref, b1_ref, w2_ref, b2_ref,
                  h_ref, z_ref):
    """Grid: (batch tile i [parallel], encoder-K tile k [arbitrary]).

    h_ref (f32) doubles as the K-reduction accumulator: zeroed at k==0,
    accumulated each step, finalized (encoder bias + projection head) at the
    last K step.  z_ref is written only on the last K step (same block across
    k, so writeback happens once per batch tile)."""
    k = pl.program_id(1)

    @pl.when(k == 0)
    def _():
        h_ref[...] = jnp.zeros_like(h_ref)

    # Encoder matmul partial sum on the MXU: cast the f32 x tile to bf16 in
    # kernel (no host pre-pass), f32 accumulate.
    x_bf = x_ref[...].astype(jnp.bfloat16)
    h_ref[...] += jnp.dot(x_bf, we_ref[...],
                          preferred_element_type=jnp.float32)

    @pl.when(k == pl.num_programs(1) - 1)
    def _():
        # Finalize encoder: bias add in f32 on the VPU.
        h = h_ref[...] + be_ref[...]                      # (tm, 512) f32
        h_ref[...] = h

        # Projection head (once per batch tile): Linear -> ReLU -> Linear.
        t = jnp.dot(h.astype(jnp.bfloat16), w1_ref[...],
                    preferred_element_type=jnp.float32) + b1_ref[...]
        t = jnp.maximum(t, 0.0)                           # ReLU in f32
        z = jnp.dot(t.astype(jnp.bfloat16), w2_ref[...],
                    preferred_element_type=jnp.float32) + b2_ref[...]
        z_ref[...] = z.astype(z_ref.dtype)


def simclr_forward(x, params, *, tm=512, tk=4096):
    """x: (B, C, H, W) float32 (NCHW). Returns (h, z) in float32.

    tm/tk are the batch / reduction tile sizes; defaults (~28 MiB VMEM with
    double buffering) are safe on v5e/v6e/v7x.  On v6e (128 MiB VMEM) they can
    be raised to tm=1024/tk=4096 for fewer We re-streams."""
    B = x.shape[0]
    d_in = x.shape[1] * x.shape[2] * x.shape[3]
    x_flat = x.reshape(B, d_in)

    we, be, w1, b1, w2, b2 = params
    feat_dim = we.shape[1]        # 512
    proj_dim = w2.shape[1]        # 128

    kind = _device_kind()
    is_v7 = "v7" in kind

    # --- K (reduction) tiling: prefer a divisor of d_in (no padded columns).
    tk, d_pad = _pick_tk(d_in, tk)
    if d_pad != d_in:
        # Ragged d_in fallback: zero-pad K (keeps the reduction exact).
        x_flat = jnp.pad(x_flat, ((0, 0), (0, d_pad - d_in)))
        we_use = jnp.pad(we, ((0, d_pad - d_in), (0, 0)))
    else:
        we_use = we

    # --- Batch tiling: clamp to batch, round to 16 sublanes; on v7x make sure
    # there are >= 2 batch tiles so both TensorCores get work.
    tm = min(tm, _round_up(B, 16))
    if is_v7 and _round_up(B, tm) // tm < 2 and tm >= 32:
        tm = _round_up(tm // 2, 16)
    b_pad = _round_up(B, tm)
    if b_pad != B:
        x_flat = jnp.pad(x_flat, ((0, b_pad - B), (0, 0)))

    # Weight-side operands: one-time bf16 cast (re-streamed cheaply as 2 B/elem).
    we_b = we_use.astype(jnp.bfloat16)
    w1_b = w1.astype(jnp.bfloat16)
    w2_b = w2.astype(jnp.bfloat16)
    # Biases stay f32 (elementwise math runs in f32 on the VPU).
    be_f = be.astype(jnp.float32)
    b1_f = b1.astype(jnp.float32)
    b2_f = b2.astype(jnp.float32)

    n_btiles = b_pad // tm
    grid = (n_btiles, d_pad // tk)

    # Resident (non-streamed) operands: same block for every grid point.
    def resident(shape):
        return pl.BlockSpec(shape, lambda i, k: (0, 0))

    flops = 2 * b_pad * (d_pad * feat_dim + feat_dim * feat_dim
                         + feat_dim * proj_dim)
    bytes_accessed = (
        b_pad * d_pad * 4                               # x read once, f32
        + n_btiles * d_pad * feat_dim * 2               # We per batch tile, bf16
        + n_btiles * (feat_dim * feat_dim + feat_dim * proj_dim) * 2  # head w
        + n_btiles * (2 * feat_dim + proj_dim) * 4      # biases
        + b_pad * feat_dim * 4 + b_pad * proj_dim * 4)  # h, z writes

    # 48 MiB leaves headroom on v7x's 64 MiB VMEM; v5e/v6e have 128 MiB.
    vmem_limit = (48 if is_v7 else 96) * 1024 * 1024

    h, z = pl.pallas_call(
        simclr_kernel,
        out_shape=(
            jax.ShapeDtypeStruct((b_pad, feat_dim), jnp.float32),
            jax.ShapeDtypeStruct((b_pad, proj_dim), jnp.float32),
        ),
        grid_spec=pltpu.PrefetchScalarGridSpec(
            num_scalar_prefetch=0,
            grid=grid,
            in_specs=[
                pl.BlockSpec((tm, tk), lambda i, k: (i, k)),        # x stream (f32)
                pl.BlockSpec((tk, feat_dim), lambda i, k: (k, 0)),  # We stream (bf16)
                resident((1, feat_dim)),                            # be
                resident((feat_dim, feat_dim)),                     # W1
                resident((1, feat_dim)),                            # b1
                resident((feat_dim, proj_dim)),                     # W2
                resident((1, proj_dim)),                            # b2
            ],
            out_specs=[
                pl.BlockSpec((tm, feat_dim), lambda i, k: (i, 0)),  # h (accumulator)
                pl.BlockSpec((tm, proj_dim), lambda i, k: (i, 0)),  # z
            ],
        ),
        compiler_params=pltpu.CompilerParams(
            dimension_semantics=("parallel", "arbitrary"),
            vmem_limit_bytes=vmem_limit,
        ),
        cost_estimate=pl.CostEstimate(
            flops=int(flops), transcendentals=0,
            bytes_accessed=int(bytes_accessed)),
    )(x_flat, we_b, be_f, w1_b, b1_f, w2_b, b2_f)

    return h[:B], z[:B]


def init_params(key, d_in, feat_dim=512, proj_dim=128):
    """Deterministic synthetic weights (shapes follow the module __init__)."""
    k = jax.random.split(key, 6)
    scale_e = 1.0 / jnp.sqrt(d_in)
    scale_1 = 1.0 / jnp.sqrt(feat_dim)
    we = jax.random.uniform(k[0], (d_in, feat_dim), jnp.float32, -scale_e, scale_e)
    be = jax.random.uniform(k[1], (1, feat_dim), jnp.float32, -scale_e, scale_e)
    w1 = jax.random.uniform(k[2], (feat_dim, feat_dim), jnp.float32, -scale_1, scale_1)
    b1 = jax.random.uniform(k[3], (1, feat_dim), jnp.float32, -scale_1, scale_1)
    w2 = jax.random.uniform(k[4], (feat_dim, proj_dim), jnp.float32, -scale_1, scale_1)
    b2 = jax.random.uniform(k[5], (1, proj_dim), jnp.float32, -scale_1, scale_1)
    return we, be, w1, b1, w2, b2


if __name__ == "__main__":
    key = jax.random.PRNGKey(0)
    kx, kp = jax.random.split(key)

    B, C, H, W = 2, 4, 16, 16
    x = jax.random.normal(kx, (B, C, H, W), jnp.float32)            # NCHW input

    params = init_params(kp, d_in=C * H * W, feat_dim=512, proj_dim=128)

    # Small K tile so the reduction grid axis (and the k==0 / k==last
    # init/finalize branches) is actually exercised at this toy size:
    # d_in=1024 -> grid = (1, 4).
    h, z = simclr_forward(x, params, tm=256, tk=256)
    jax.block_until_ready((h, z))

    # Reference in plain JAX, using the same bf16-operand / f32-accumulate
    # recipe as the kernel.
    x_flat = x.reshape(B, -1)
    we, be, w1, b1, w2, b2 = params
    h_ref = jnp.dot(x_flat.astype(jnp.bfloat16), we.astype(jnp.bfloat16),
                    preferred_element_type=jnp.float32) + be
    t_ref = jnp.maximum(
        jnp.dot(h_ref.astype(jnp.bfloat16), w1.astype(jnp.bfloat16),
                preferred_element_type=jnp.float32) + b1, 0.0)
    z_ref = jnp.dot(t_ref.astype(jnp.bfloat16), w2.astype(jnp.bfloat16),
                    preferred_element_type=jnp.float32) + b2

    assert h.shape == (B, 512) and z.shape == (B, 128)
    assert jnp.allclose(h, h_ref, atol=5e-2, rtol=5e-2)
    assert jnp.allclose(z, z_ref, atol=5e-2, rtol=5e-2)

    print("KERNEL_OK")
</pallas_src>

<mosaic_0001>
module attributes {stable_mosaic.version = 11 : i64} {
  func.func @simclr_kernel(%arg0: i32, %arg1: i32, %arg2: memref<16x256xf32, #tpu.memory_space<vmem>>, %arg3: memref<256x512xbf16, #tpu.memory_space<vmem>>, %arg4: memref<1x512xf32, #tpu.memory_space<vmem>>, %arg5: memref<512x512xbf16, #tpu.memory_space<vmem>>, %arg6: memref<1x512xf32, #tpu.memory_space<vmem>>, %arg7: memref<512x128xbf16, #tpu.memory_space<vmem>>, %arg8: memref<1x128xf32, #tpu.memory_space<vmem>>, %arg9: memref<16x512xf32, #tpu.memory_space<vmem>>, %arg10: memref<16x128xf32, #tpu.memory_space<vmem>>) attributes {dimension_semantics = [#tpu.dimension_semantics<parallel>, #tpu.dimension_semantics<arbitrary>], iteration_bounds = array<i64: 1, 4>, scalar_prefetch = 0 : i64, scratch_operands = 0 : i64, tpu.core_type = #tpu.core_type<tc>, window_params = [{transform_indices = @transform_0, window_bounds = array<i64: 16, 256>}, {transform_indices = @transform_1, window_bounds = array<i64: 256, 512>}, {pipeline_mode = #tpu.pipeline_mode<synchronous>, transform_indices = @transform_2, window_bounds = array<i64: 1, 512>}, {pipeline_mode = #tpu.pipeline_mode<synchronous>, transform_indices = @transform_3, window_bounds = array<i64: 512, 512>}, {pipeline_mode = #tpu.pipeline_mode<synchronous>, transform_indices = @transform_4, window_bounds = array<i64: 1, 512>}, {pipeline_mode = #tpu.pipeline_mode<synchronous>, transform_indices = @transform_5, window_bounds = array<i64: 512, 128>}, {pipeline_mode = #tpu.pipeline_mode<synchronous>, transform_indices = @transform_6, window_bounds = array<i64: 1, 128>}, {transform_indices = @transform_7, window_bounds = array<i64: 16, 512>}, {transform_indices = @transform_8, window_bounds = array<i64: 16, 128>}]} {
    %c0_i32 = arith.constant 0 : i32
    %0 = arith.cmpi eq, %arg1, %c0_i32 : i32
    %1 = arith.extui %0 : i1 to i32
    %c0_i32_0 = arith.constant 0 : i32
    %2 = arith.cmpi ne, %1, %c0_i32_0 : i32
    scf.if %2 {
      %cst_9 = arith.constant 0.000000e+00 : f32
      %13 = vector.broadcast %cst_9 : f32 to vector<16x512xf32>
      %c0_10 = arith.constant 0 : index
      %c0_11 = arith.constant 0 : index
      %14 = vector.load %arg9[%c0_10, %c0_11] : memref<16x512xf32, #tpu.memory_space<vmem>>, vector<16x512xf32>
      tpu.vector_store %arg9[%c0_10, %c0_11], %13 {strides = array<i32>} : memref<16x512xf32, #tpu.memory_space<vmem>>, vector<16x512xf32>,
    } else {
    }
    %c0 = arith.constant 0 : index
    %c0_1 = arith.constant 0 : index
    %3 = vector.load %arg2[%c0, %c0_1] : memref<16x256xf32, #tpu.memory_space<vmem>>, vector<16x256xf32>
    %4 = arith.truncf %3 : vector<16x256xf32> to vector<16x256xbf16>
    %c0_2 = arith.constant 0 : index
    %c0_3 = arith.constant 0 : index
    %5 = vector.load %arg9[%c0_2, %c0_3] : memref<16x512xf32, #tpu.memory_space<vmem>>, vector<16x512xf32>
    %c0_4 = arith.constant 0 : index
    %c0_5 = arith.constant 0 : index
    %6 = vector.load %arg3[%c0_4, %c0_5] : memref<256x512xbf16, #tpu.memory_space<vmem>>, vector<256x512xbf16>
    %cst = arith.constant dense<0.000000e+00> : vector<16x512xf32>
    %7 = tpu.matmul %4, %6, %cst {dimension_numbers = #tpu.dot_dimension_numbers<[1], [0], [0], [1], [0, 0, 1, 1], [], []>} : vector<16x256xbf16>, vector<256x512xbf16>, vector<16x512xf32> -> vector<16x512xf32>
    %8 = arith.addf %5, %7 : vector<16x512xf32>
    %c0_6 = arith.constant 0 : index
    %c0_7 = arith.constant 0 : index
    %9 = vector.load %arg9[%c0_6, %c0_7] : memref<16x512xf32, #tpu.memory_space<vmem>>, vector<16x512xf32>
    tpu.vector_store %arg9[%c0_6, %c0_7], %8 {strides = array<i32>} : memref<16x512xf32, #tpu.memory_space<vmem>>, vector<16x512xf32>,
    %c3_i32 = arith.constant 3 : i32
    %10 = arith.cmpi eq, %arg1, %c3_i32 : i32
    %11 = arith.extui %10 : i1 to i32
    %c0_i32_8 = arith.constant 0 : i32
    %12 = arith.cmpi ne, %11, %c0_i32_8 : i32
    scf.if %12 {
      %c0_9 = arith.constant 0 : index
      %c0_10 = arith.constant 0 : index
      %13 = vector.load %arg9[%c0_9, %c0_10] : memref<16x512xf32, #tpu.memory_space<vmem>>, vector<16x512xf32>
      %c0_11 = arith.constant 0 : index
      %c0_12 = arith.constant 0 : index
      %14 = vector.load %arg4[%c0_11, %c0_12] : memref<1x512xf32, #tpu.memory_space<vmem>>, vector<1x512xf32>
      %15 = vector.broadcast %14 : vector<1x512xf32> to vector<16x512xf32>
      %16 = arith.addf %13, %15 : vector<16x512xf32>
      %c0_13 = arith.constant 0 : index
      %c0_14 = arith.constant 0 : index
      %17 = vector.load %arg9[%c0_13, %c0_14] : memref<16x512xf32, #tpu.memory_space<vmem>>, vector<16x512xf32>
      tpu.vector_store %arg9[%c0_13, %c0_14], %16 {strides = array<i32>} : memref<16x512xf32, #tpu.memory_space<vmem>>, vector<16x512xf32>,
      %18 = arith.truncf %16 : vector<16x512xf32> to vector<16x512xbf16>
      %c0_15 = arith.constant 0 : index
      %c0_16 = arith.constant 0 : index
      %19 = vector.load %arg5[%c0_15, %c0_16] : memref<512x512xbf16, #tpu.memory_space<vmem>>, vector<512x512xbf16>
      %cst_17 = arith.constant dense<0.000000e+00> : vector<16x512xf32>
      %20 = tpu.matmul %18, %19, %cst_17 {dimension_numbers = #tpu.dot_dimension_numbers<[1], [0], [0], [1], [0, 0, 1, 1], [], []>} : vector<16x512xbf16>, vector<512x512xbf16>, vector<16x512xf32> -> vector<16x512xf32>
      %c0_18 = arith.constant 0 : index
      %c0_19 = arith.constant 0 : index
      %21 = vector.load %arg6[%c0_18, %c0_19] : memref<1x512xf32, #tpu.memory_space<vmem>>, vector<1x512xf32>
      %22 = vector.broadcast %21 : vector<1x512xf32> to vector<16x512xf32>
      %23 = arith.addf %20, %22 : vector<16x512xf32>
      %cst_20 = arith.constant 0.000000e+00 : f32
      %24 = vector.broadcast %cst_20 : f32 to vector<16x512xf32>
      %25 = arith.maximumf %23, %24 : vector<16x512xf32>
      %26 = arith.truncf %25 : vector<16x512xf32> to vector<16x512xbf16>
      %c0_21 = arith.constant 0 : index
      %c0_22 = arith.constant 0 : index
      %27 = vector.load %arg7[%c0_21, %c0_22] : memref<512x128xbf16, #tpu.memory_space<vmem>>, vector<512x128xbf16>
      %cst_23 = arith.constant dense<0.000000e+00> : vector<16x128xf32>
      %28 = tpu.matmul %26, %27, %cst_23 {dimension_numbers = #tpu.dot_dimension_numbers<[1], [0], [0], [1], [0, 0, 1, 1], [], []>} : vector<16x512xbf16>, vector<512x128xbf16>, vector<16x128xf32> -> vector<16x128xf32>
      %c0_24 = arith.constant 0 : index
      %c0_25 = arith.constant 0 : index
      %29 = vector.load %arg8[%c0_24, %c0_25] : memref<1x128xf32, #tpu.memory_space<vmem>>, vector<1x128xf32>
      %30 = vector.broadcast %29 : vector<1x128xf32> to vector<16x128xf32>
      %31 = arith.addf %28, %30 : vector<16x128xf32>
      %c0_26 = arith.constant 0 : index
      %c0_27 = arith.constant 0 : index
      %32 = vector.load %arg10[%c0_26, %c0_27] : memref<16x128xf32, #tpu.memory_space<vmem>>, vector<16x128xf32>
      tpu.vector_store %arg10[%c0_26, %c0_27], %31 {strides = array<i32>} : memref<16x128xf32, #tpu.memory_space<vmem>>, vector<16x128xf32>,
    } else {
    }
    return
  }
  func.func @transform_0(%arg0: i32, %arg1: i32) -> (i32, i32) {
    %c0_i32 = arith.constant 0 : i32
    return %arg0, %arg1 : i32, i32
  }
  func.func @transform_1(%arg0: i32, %arg1: i32) -> (i32, i32) {
    %c0_i32 = arith.constant 0 : i32
    %c0_i32_0 = arith.constant 0 : i32
    return %arg1, %c0_i32 : i32, i32
  }
  func.func @transform_2(%arg0: i32, %arg1: i32) -> (i32, i32) {
    %c0_i32 = arith.constant 0 : i32
    %c0_i32_0 = arith.constant 0 : i32
    %c0_i32_1 = arith.constant 0 : i32
    return %c0_i32, %c0_i32_0 : i32, i32
  }
  func.func @transform_3(%arg0: i32, %arg1: i32) -> (i32, i32) {
    %c0_i32 = arith.constant 0 : i32
    %c0_i32_0 = arith.constant 0 : i32
    %c0_i32_1 = arith.constant 0 : i32
    return %c0_i32, %c0_i32_0 : i32, i32
  }
  func.func @transform_4(%arg0: i32, %arg1: i32) -> (i32, i32) {
    %c0_i32 = arith.constant 0 : i32
    %c0_i32_0 = arith.constant 0 : i32
    %c0_i32_1 = arith.constant 0 : i32
    return %c0_i32, %c0_i32_0 : i32, i32
  }
  func.func @transform_5(%arg0: i32, %arg1: i32) -> (i32, i32) {
    %c0_i32 = arith.constant 0 : i32
    %c0_i32_0 = arith.constant 0 : i32
    %c0_i32_1 = arith.constant 0 : i32
    return %c0_i32, %c0_i32_0 : i32, i32
  }
  func.func @transform_6(%arg0: i32, %arg1: i32) -> (i32, i32) {
    %c0_i32 = arith.constant 0 : i32
    %c0_i32_0 = arith.constant 0 : i32
    %c0_i32_1 = arith.constant 0 : i32
    return %c0_i32, %c0_i32_0 : i32, i32
  }
  func.func @transform_7(%arg0: i32, %arg1: i32) -> (i32, i32) {
    %c0_i32 = arith.constant 0 : i32
    %c0_i32_0 = arith.constant 0 : i32
    return %arg0, %c0_i32 : i32, i32
  }
  func.func @transform_8(%arg0: i32, %arg1: i32) -> (i32, i32) {
    %c0_i32 = arith.constant 0 : i32
    %c0_i32_0 = arith.constant 0 : i32
    return %arg0, %c0_i32 : i32, i32
  }
}

</mosaic_0001>

<bundles_post_ra>
// kernel: tpu_custom_call.1
= control target key start
LH: loop header
LB: loop body
LE: loop exit
PB: predicated region body
PF: predicated region fallthrough
CT: control target
= control target key end

     0   :  { %s3830_s0 = inlined_call_operand.hbm [shape: f32[16,1024], index: 0, kind: input, shape index: {}]   ;;  %s3831_s1 = inlined_call_operand.hbm [shape: bf16[1024,512], index: 1, kind: input, shape index: {}]   ;;  %s3832_s2 = inlined_call_operand.hbm [shape: f32[1,512], index: 2, kind: input, shape index: {}]   ;;  %s3833_s3 = inlined_call_operand.hbm [shape: bf16[512,512], index: 3, kind: input, shape index: {}]   ;;  %s3834_s4 = inlined_call_operand.vmem [shape: f32[1,512], index: 4, kind: input, shape index: {}]   ;;  %s3835_s5 = inlined_call_operand.hbm [shape: bf16[512,128], index: 5, kind: input, shape index: {}]   ;;  %s3836_s6 = inlined_call_operand.vmem [shape: f32[1,128], index: 6, kind: input, shape index: {}]   ;;  %s3837_s7 = inlined_call_operand.hbm [shape: f32[16,512], index: 7, kind: output, shape index: {0}]   ;;  %s3838_s8 = inlined_call_operand.hbm [shape: f32[16,128], index: 8, kind: output, shape index: {1}]  }
   0x1   :  { %3848 = sst [smem:[#allocation22_spill]] %s3830_s0 }
   0x2   :  { %3849 = sst [smem:[#allocation23_spill]] %s3832_s2 }
   0x3   :  { %3850 = sst [smem:[#allocation24_spill]] %s3833_s3 }
   0x4   :  { %3851 = sst [smem:[#allocation25_spill]] %s3835_s5 }
   0x5   :  { %3852 = sst [smem:[#allocation26_spill]] %s3837_s7 }
   0x6   :  { %3853 = sst [smem:[#allocation27_spill]] %s3838_s8 }
   0x7   :  { %14 = vsyncpa [#allocation3], 0 }
   0x8   :  { %16 = vsyncpa [#allocation3 + $0x1], 0 }
   0x9   :  { %17 = vsyncpa [#allocation6], 0 }
   0xa   :  { %19 = vsyncpa [#allocation6 + $0x1], 0 }
   0xb   :  { %20 = vsyncpa [#allocation9], 0 }
   0xc   :  { %21 = vsyncpa [#allocation4], 0 }
   0xd   :  { %22 = vsyncpa [#allocation13], 0  ;;  %s3520_s27 = smov 0   ;;  %s3522_s28 = smov 0  }
   0xe   :  { %s3524_s29 = smov 0   ;;  %s3526_s30 = smov 0  }
   0xf   :  { %s3528_s9 = smov 0   ;;  %s3530_s10 = smov 0  }
  0x10 LB: > { %3854 = sst [smem:[#allocation20_spill]] %s3456_s10  ;;  %s3549_s11 = sadd.s32 4294967295, %s3456_s10   ;;  %s3456_s10 = sphi %s3530_s10, %s28_s10   ;;  %s3452_s9 = sphi %s3528_s9, %s3882_s9   ;;  %s3448_s30 = sphi %s3526_s30, %s3881_s30   ;;  %s3444_s29 = sphi %s3524_s29, %s3880_s29   ;;  %s3440_s28 = sphi %s3522_s28, %s3879_s28   ;;  %s3436_s27 = sphi %s3520_s27, %s3878_s27  }
  0x11   : > { %p56_p0 = scmp.ne.s32.totalorder %s3444_s29, %s3440_s28  ;;  %p57_p1 = scmp.eq.s32.totalorder %s3456_s10, 0 }
  0x12   : > { %p62_p2 = scmp.ne.s32.totalorder %s3440_s28, %s3436_s27  ;;  %p3839_p3 = scmp.eq.s32.totalorder %s3549_s11, 0 }
  0x13   : > { %p58_p4 = por %p57_p1, %p56_p0  ;;  %p2471_p5 = scmp.ge.s32.totalorder %s3456_s10, 1 }
  0x14   : > { %p3560_p6 = por %p3839_p3, %p62_p2  ;;  %p256_p7 = scmp.lt.s32.totalorder %s3456_s10, 5 }
  0x15   : > { %s3458_s15 = smov [#allocation7]   ;;  %p2813_p10 = scmp.lt.s32.totalorder %s3456_s10, 4 }
  0x16   : > { %s3855_s13 = scalar_select %p3560_p6, 1, 0 }
  0x17   : > { %p3565_p8 = pnand %p2471_p5, %p256_p7  ;;  %s269_s16 = sshll.u32 %s3458_s15, 4  ;;  %s270_s16 = int_to_ptr.vmem [resolvable:$true] %s269_s16 }
  0x18   : > { %p3578_p12 = pnand %p2813_p10, %p58_p4  ;;  %s3459_s19 = smov [#allocation8]  }
  0x19   : > { %s3856_s14 = scalar_select %p3565_p8, 1, 0 }
  0x1a   : > { %p2793_p9 = pneg %p3565_p8  ;;  %s279_s20 = sshll.u32 %s3459_s19, 4  ;;  %s280_s20 = int_to_ptr.vmem [resolvable:$true] %s279_s20 }
  0x1b   : > { %s3215_s21 = scalar_lea.vmem %s270_s16, 64  ;;  %p3223_p5 = scmp.lt.s32.totalorder %s270_s16, %s270_s16 }
  0x1c   : > { %p3574_p11 = pnand %p2793_p9, %p3839_p3  ;;  %p3216_p0 = scmp.ne.s32.totalorder %s270_s16, %s3215_s21 }
  0x1d   : > { %p3224_p7 = scmp.lt.s32.totalorder %s3215_s21, %s3215_s21 }
  0x1e   : > { %p3206_p13 = pneg %p3574_p11 }
  0x1f   : > { %p3225_p9 = por %p3224_p7, %p3223_p5 }
  0x20   : > { %p3218_p1 = pnand %p3216_p0, %p3206_p13 }
  0x22   : > { %p3219_p2 = pneg %p3218_p1 }
  0x24   : > { %p3226_p3 = pnand %p3225_p9, %p3219_p2 }
  0x26   : > { %3229 = shalt.err (!%p3226_p3)
}
  0x27   : > { %s3859_s2 = sld [smem:[#allocation23_spill]]  ;;  %s3241_s24 = scalar_lea.vmem %s280_s20, 16384 }
  0x28   : > { %p3242_p4 = scmp.ne.s32.totalorder %s280_s20, %s3241_s24  ;;  %p3249_p1 = scmp.lt.s32.totalorder %s280_s20, %s280_s20 }
  0x29   : > { %p3250_p6 = scmp.lt.s32.totalorder %s3241_s24, %s3241_s24 }
  0x2a   : > { %p3244_p10 = pnand %p3242_p4, %p3206_p13 }
  0x2b   : > { %p3251_p8 = por %p3250_p6, %p3249_p1 }
  0x2c   : > { %p3245_p0 = pneg %p3244_p10 }
  0x2d   : > { %2796 = dma.hbm_to_vmem [thread:$0]  (!%p3574_p11), %s3859_s2, 64, %s270_s16, [#allocation6]  }
  0x2e   : > { %p3252_p5 = pnand %p3251_p8, %p3245_p0 }
  0x30   : > { %3255 = shalt.err (!%p3252_p5)
}
  0x31   : > { %s3842_s25 = smov 256   ;;  %s3844_s26 = smov 16  }
  0x32   : > { %s3860_s3 = sld [smem:[#allocation24_spill]]  ;;  %s3462_s16 = smov [#allocation10]  }
  0x33   : > { %s295_s19 = sshll.u32 %s3462_s16, 4  ;;  %s296_s19 = int_to_ptr.vmem [resolvable:$true] %s295_s19 }
  0x34   : > { %s3267_s21 = scalar_lea.vmem %s296_s19, 4096  ;;  %p3275_p2 = scmp.lt.s32.totalorder %s296_s19, %s296_s19 }
  0x35   : > { %p3268_p3 = scmp.ne.s32.totalorder %s296_s19, %s3267_s21  ;;  %p3276_p7 = scmp.lt.s32.totalorder %s3267_s21, %s3267_s21 }
  0x37   : > { %p3270_p6 = pnand %p3268_p3, %p3206_p13  ;;  %p3277_p9 = por %p3276_p7, %p3275_p2 }
  0x38   : > { %2799 = dma.hbm_to_vmem [thread:$0]  (!%p3574_p11), %s3860_s3, 16384, %s280_s20, [#allocation9], %s3842_s25, %s3842_s25, %s3844_s26  }
  0x39   : > { %p3271_p8 = pneg %p3270_p6 }
  0x3b   : > { %p3278_p4 = pnand %p3277_p9, %p3271_p8 }
  0x3d   : > { %3281 = shalt.err (!%p3278_p4)
}
  0x3e   : > { %s3463_s22 = smov 64   ;;  %s3464_s20 = smov 4  }
  0x3f   : > { %s3861_s5 = sld [smem:[#allocation25_spill]]  ;;  %s3612_s27 = sand.u32 1, %s3444_s29  }
  0x40   : > { %s37_s15 = sadd.s32 1, %s3452_s9  ;;  %s2476_s16 = sshll.u32 %s3612_s27, 5 }
  0x41   : > { %p38_p13 = scmp.ge.s32.totalorder %s37_s15, 4  ;;  %s2722_s21 = sshll.u32 %s3452_s9, 8 }
  0x42   : > { %s316_s12 = scalar_lea.vmem [#allocation2], %s2476_s16  ;;  %s3863_s0 = sld [smem:[#allocation22_spill]] }
  0x43   : > { %s326_s25 = sshll.u32 %s316_s12, 4  ;;  %s3884_s15 = smov (%p38_p13, %s37_s15), 0  ;;  %s327_s25 = int_to_ptr.vmem [resolvable:$true] %s326_s25 }
  0x44   : > { %3862 = sst [smem:[#allocation21_spill]] %s3884_s15  ;;  %s313_s24 = scalar_lea.sflag [#allocation3], %s3612_s27 }
  0x45   : > { %2802 = dma.hbm_to_vmem [thread:$0]  (!%p3574_p11), %s3861_s5, 4096, %s296_s19, [#allocation9], %s3463_s22, %s3463_s22, %s3464_s20  }
  0x46   : > { %s45_s19 = ssub.s32 %s3452_s9, %s3884_s15  ;;  %s336_s20 = sand.u32 1, %s3456_s10  }
  0x47   : > { %p3624_p11 = scmp.eq.s32.totalorder %s45_s19, 0  ;;  %p3284_p10 = pneg %p3578_p12 }
  0x48   : > { %s325_s23 = scalar_lea.hbm %s3863_s0, %s2722_s21  ;;  %s3295_s2 = scalar_lea.vmem %s327_s25, 512 }
  0x49   : > { %p3296_p0 = scmp.ne.s32.totalorder %s327_s25, %s3295_s2  ;;  %s3465_s12 = smov [#allocation2]  }
  0x4a   : > { %s3300_s26 = sshll.u32 %s3465_s12, 4  ;;  %s3301_s26 = int_to_ptr.vmem [resolvable:$false] %s3300_s26 }
  0x4b   : > { %p3298_p1 = pnand %p3296_p0, %p3284_p10  ;;  %s3302_s16 = scalar_lea.vmem %s3301_s26, 1024 }
  0x4c   : > { %p3303_p3 = scmp.lt.s32.totalorder %s327_s25, %s3301_s26  ;;  %p3304_p6 = scmp.lt.s32.totalorder %s3302_s16, %s3295_s2 }
  0x4d   : > { %p3299_p5 = pneg %p3298_p1 }
  0x4e   : > { %p3305_p8 = por %p3304_p6, %p3303_p3 }
  0x50   : > { %p3306_p2 = pnand %p3305_p8, %p3299_p5 }
  0x52   : > { %3309 = shalt.err (!%p3306_p2)
}
  0x53   : > { %s3466_s21 = smov 1024   ;;  %s3865_s17 = smov 16  }
  0x54   : > { %s3866_s19 = smov 256   ;;  %s3867_s12 = sadd.s32 1, %s3444_s29 }
  0x55   : > { %2806 = dma.hbm_to_vmem [thread:$0]  (!%p3578_p12), %s325_s23, 512, %s327_s25, %s313_s24, %s3466_s21, %s3866_s19, %s3865_s17  }
  0x56   : > { %s3644_s0 = scalar_select %p3624_p11, %s3444_s29, %s3867_s12  }
  0x57   : > { %s2479_s2 = sshll.u32 %s3612_s27, 9  ;;  %s2724_s26 = sshll.u32 %s3452_s9, 13 }
  0x58   : > { %s347_s5 = scalar_lea.hbm %s3831_s1, %s2724_s26  ;;  %s340_s15 = scalar_lea.vmem [#allocation5], %s2479_s2 }
  0x59   : > { %s348_s10 = sshll.u32 %s340_s15, 4  ;;  %s337_s8 = scalar_lea.sflag [#allocation6], %s336_s20  ;;  %s349_s10 = int_to_ptr.vmem [resolvable:$true] %s348_s10 }
  0x5a   : > { %s3323_s7 = scalar_lea.vmem %s349_s10, 8192  ;;  %s3467_s25 = smov [#allocation5]  }
  0x5b   : > { %p3324_p7 = scmp.ne.s32.totalorder %s349_s10, %s3323_s7  ;;  %s3328_s23 = sshll.u32 %s3467_s25, 4  ;;  %s3329_s23 = int_to_ptr.vmem [resolvable:$false] %s3328_s23 }
  0x5c   : > { %s3330_s22 = scalar_lea.vmem %s3329_s23, 16384  ;;  %p3331_p13 = scmp.lt.s32.totalorder %s349_s10, %s3329_s23 }
  0x5d   : > { %p3326_p9 = pnand %p3324_p7, %p3284_p10  ;;  %p3332_p11 = scmp.lt.s32.totalorder %s3330_s22, %s3323_s7 }
  0x5f   : > { %p3327_p4 = pneg %p3326_p9  ;;  %p3333_p0 = por %p3332_p11, %p3331_p13 }
  0x61   : > { %p3334_p1 = pnand %p3333_p0, %p3327_p4 }
  0x63   : > { %3337 = shalt.err (!%p3334_p1)
}
  0x64   : > { %2809 = dma.hbm_to_vmem [thread:$0]  (!%p3578_p12), %s347_s5, 8192, %s349_s10, %s337_s8, %s3866_s19, %s3866_s19, %s3865_s17  }
  0x65   : > { %p3868_p5 = scmp.ne.s32.totalorder %s3856_s14, 0 }
  0x66   : > { %s362_s3 = sand.u32 (!%p3868_p5), 1, %s3440_s28   ;;  %p3869_p10 = scmp.ne.s32.totalorder (!%p3868_p5), %s3855_s13, 0 }
  0x67   : > { %360 = sbr.rel (%p3868_p5) target bundleno = 976 (0x3d0), region = 48  ;;  %s2484_s27 = sshll.u32 (!%p3868_p5), %s362_s3, 5 }
  0x68   : > { %s363_s15 = scalar_lea.sflag (!%p3868_p5), [#allocation3], %s362_s3  ;;  %s3662_s20 = scalar_lea.vmem (!%p3868_p5), [#allocation2], %s2484_s27 }
  0x6c   : > { %3411 = dma.done.wait (%p3869_p10), %s363_s15, 512  }
  0x6d   : > { %3413 = vsyncadd (%p3869_p10), %s363_s15, 4294966784  ;;  %s371_s7 = sand.u32 1, %s3549_s11   ;;  %s2485_s18 = sshll.u32 %s362_s3, 9 }
  0x6e   : > { %s372_s5 = scalar_lea.sflag [#allocation6], %s371_s7  ;;  %s3669_s8 = scalar_lea.vmem [#allocation5], %s2485_s18 }
  0x6f   : > { %3415 = dma.done.wait (%p3869_p10), %s372_s5, 8192  }
  0x70   : > { %3417 = vsyncadd (%p3869_p10), %s372_s5, 4294959104  ;;  %p3870_p12 = scmp.eq.s32.totalorder %s3549_s11, 0 }
  0x72   : > { %3419 = dma.done.wait (%p3870_p12), [#allocation6], 64   ;;  %p3871_p3 = pmov %p3870_p12 }
  0x74   : > { %3421 = vsyncadd (%p3871_p3), [#allocation6], 4294967232  ;;  %p3872_p6 = pmov %p3871_p3 }
  0x75   : > { %p3873_p8 = pmov %p3871_p3 }
  0x76   : > { %3423 = dma.done.wait (%p3872_p6), [#allocation9], 20480  }
  0x77   : > { %3425 = vsyncadd (%p3873_p8), [#allocation9], 4294946816  ;;  %p2489_p2 = scmp.ne.s32.totalorder %s3448_s30, 0 }
  0x79   : > { %429 = sbr.rel (%p2489_p2) target bundleno = 131 (0x83), region = 72 }
  0x7e   : > { %v3468_v0 = vmov 0.0  }
  0x7f   : > { %430 = vst [vmem:[#allocation11] sm:$0xff] %v3468_v0  ;;  %431 = vst [vmem:[#allocation11 + $0x8] sm:$0xff] %v3468_v0 }
  0x80   : > { %432 = vst [vmem:[#allocation11 + $0x10] sm:$0xff] %v3468_v0  ;;  %433 = vst [vmem:[#allocation11 + $0x18] sm:$0xff] %v3468_v0 }
  0x81   : > { %434 = vst [vmem:[#allocation11 + $0x20] sm:$0xff] %v3468_v0  ;;  %435 = vst [vmem:[#allocation11 + $0x28] sm:$0xff] %v3468_v0 }
  0x82   : > { %436 = vst [vmem:[#allocation11 + $0x30] sm:$0xff] %v3468_v0  ;;  %437 = vst [vmem:[#allocation11 + $0x38] sm:$0xff] %v3468_v0 }
  0x83 PF: > { %v2884_v1 = vld [vmem:[%s3669_s8 + $0xe4] ss:$16 sps:$4 sm:$0xff]   ;;  %v2886_v2 = vld [vmem:[%s3669_s8 + $0xec] ss:$16 sps:$4 sm:$0xff]   ;;  %v2888_v3 = vld [vmem:[%s3669_s8 + $0xe0] ss:$16 sps:$4 sm:$0xff]  }
  0x84   : > { %836 = vmatprep.subr.bf16.mxu0 %v2884_v1  ;;  %v2889_v4 = vld [vmem:[%s3669_s8 + $0xe8] ss:$16 sps:$4 sm:$0xff]   ;;  %879 = vmatprep.subr.bf16.mxu1 %v2886_v2  ;;  %v2890_v5 = vld [vmem:[%s3669_s8 + $0xc4] ss:$16 sps:$4 sm:$0xff]   ;;  %v2892_v6 = vld [vmem:[%s3669_s8 + $0xcc] ss:$16 sps:$4 sm:$0xff]  }
  0x85   : > { %837 = vmatpush1.bf16.msra.mxu0 %v2888_v3  ;;  %880 = vmatpush1.bf16.msra.mxu1 %v2889_v4  ;;  %v2894_v7 = vld [vmem:[%s3669_s8 + $0xc0] ss:$16 sps:$4 sm:$0xff]   ;;  %v2895_v8 = vld [vmem:[%s3669_s8 + $0xc8] ss:$16 sps:$4 sm:$0xff]   ;;  %v2896_v9 = vld [vmem:[%s3669_s8 + $0xa4] ss:$16 sps:$4 sm:$0xff]  }
  0x86   : > { %838 = vmatprep.subr.bf16.mxu0 %v2890_v5  ;;  %881 = vmatprep.subr.bf16.mxu1 %v2892_v6  ;;  %v2898_v10 = vld [vmem:[%s3669_s8 + $0xac] ss:$16 sps:$4 sm:$0xff]   ;;  %v2900_v11 = vld [vmem:[%s3669_s8 + $0xa0] ss:$16 sps:$4 sm:$0xff]   ;;  %v2901_v12 = vld [vmem:[%s3669_s8 + $0xa8] ss:$16 sps:$4 sm:$0xff]  }
  0x87   : > { %v2902_v13 = vld [vmem:[%s3669_s8 + $0x84] ss:$16 sps:$4 sm:$0xff]   ;;  %v2904_v14 = vld [vmem:[%s3669_s8 + $0x8c] ss:$16 sps:$4 sm:$0xff]   ;;  %v2906_v15 = vld [vmem:[%s3669_s8 + $0x80] ss:$16 sps:$4 sm:$0xff]  }
  0x88   : > { %v2907_v16 = vld [vmem:[%s3669_s8 + $0x88] ss:$16 sps:$4 sm:$0xff]   ;;  %v2908_v17 = vld [vmem:[%s3669_s8 + $0x64] ss:$16 sps:$4 sm:$0xff]   ;;  %v2910_v18 = vld [vmem:[%s3669_s8 + $0x6c] ss:$16 sps:$4 sm:$0xff]  }
  0x89   : > { %839 = vmatpush1.bf16.msra.mxu0 %v2894_v7  ;;  %882 = vmatpush1.bf16.msra.mxu1 %v2895_v8  ;;  %v2912_v19 = vld [vmem:[%s3669_s8 + $0x60] ss:$16 sps:$4 sm:$0xff]   ;;  %v2913_v20 = vld [vmem:[%s3669_s8 + $0x68] ss:$16 sps:$4 sm:$0xff]   ;;  %v2914_v21 = vld [vmem:[%s3669_s8 + $0x44] ss:$16 sps:$4 sm:$0xff]  }
  0x8a   : > { %840 = vmatprep.subr.bf16.mxu0 %v2896_v9  ;;  %883 = vmatprep.subr.bf16.mxu1 %v2898_v10  ;;  %v2916_v22 = vld [vmem:[%s3669_s8 + $0x4c] ss:$16 sps:$4 sm:$0xff]   ;;  %v2918_v23 = vld [vmem:[%s3669_s8 + $0x40] ss:$16 sps:$4 sm:$0xff]   ;;  %v2919_v24 = vld [vmem:[%s3669_s8 + $0x48] ss:$16 sps:$4 sm:$0xff]  }
  0x8b   : > { %v2920_v25 = vld [vmem:[%s3669_s8 + $0x24] ss:$16 sps:$4 sm:$0xff]   ;;  %v2922_v26 = vld [vmem:[%s3669_s8 + $0x2c] ss:$16 sps:$4 sm:$0xff]   ;;  %v2924_v27 = vld [vmem:[%s3669_s8 + $0x20] ss:$16 sps:$4 sm:$0xff]  }
  0x8c   : > { %v2925_v28 = vld [vmem:[%s3669_s8 + $0x28] ss:$16 sps:$4 sm:$0xff]   ;;  %v2926_v29 = vld [vmem:[%s3669_s8 + $0x4] ss:$16 sps:$4 sm:$0xff]   ;;  %v2928_v30 = vld [vmem:[%s3669_s8 + $0xc] ss:$16 sps:$4 sm:$0xff]  }
  0x8d   : > { %841 = vmatpush1.bf16.msra.mxu0 %v2900_v11  ;;  %884 = vmatpush1.bf16.msra.mxu1 %v2901_v12  ;;  %v2930_v31 = vld [vmem:[%s3669_s8] ss:$16 sps:$4 sm:$0xff]   ;;  %v2931_v32 = vld [vmem:[%s3669_s8 + $0x8] ss:$16 sps:$4 sm:$0xff]   ;;  %v2932_v33 = vld [vmem:[%s3669_s8 + $0x1e4] ss:$16 sps:$4 sm:$0xff]  }
  0x8e   : > { %842 = vmatprep.subr.bf16.mxu0 %v2902_v13  ;;  %885 = vmatprep.subr.bf16.mxu1 %v2904_v14  ;;  %v2934_v34 = vld [vmem:[%s3669_s8 + $0x1ec] ss:$16 sps:$4 sm:$0xff]   ;;  %v2936_v35 = vld [vmem:[%s3669_s8 + $0x1e0] ss:$16 sps:$4 sm:$0xff]   ;;  %v2937_v36 = vld [vmem:[%s3669_s8 + $0x1e8] ss:$16 sps:$4 sm:$0xff]  }
  0x8f   : > { %v2938_v37 = vld [vmem:[%s3669_s8 + $0x1c4] ss:$16 sps:$4 sm:$0xff]   ;;  %v2940_v38 = vld [vmem:[%s3669_s8 + $0x1cc] ss:$16 sps:$4 sm:$0xff]   ;;  %v2942_v39 = vld [vmem:[%s3669_s8 + $0x1c0] ss:$16 sps:$4 sm:$0xff]  }
  0x90   : > { %v2943_v40 = vld [vmem:[%s3669_s8 + $0x1c8] ss:$16 sps:$4 sm:$0xff]   ;;  %v2944_v41 = vld [vmem:[%s3669_s8 + $0x1a4] ss:$16 sps:$4 sm:$0xff]   ;;  %v2946_v42 = vld [vmem:[%s3669_s8 + $0x1ac] ss:$16 sps:$4 sm:$0xff]  }
  0x91   : > { %843 = vmatpush1.bf16.msra.mxu0 %v2906_v15  ;;  %886 = vmatpush1.bf16.msra.mxu1 %v2907_v16  ;;  %v2948_v43 = vld [vmem:[%s3669_s8 + $0x1a0] ss:$16 sps:$4 sm:$0xff]   ;;  %v2949_v44 = vld [vmem:[%s3669_s8 + $0x1a8] ss:$16 sps:$4 sm:$0xff]   ;;  %v2950_v45 = vld [vmem:[%s3669_s8 + $0x184] ss:$16 sps:$4 sm:$0xff]  }
  0x92   : > { %844 = vmatprep.subr.bf16.mxu0 %v2908_v17  ;;  %887 = vmatprep.subr.bf16.mxu1 %v2910_v18  ;;  %v2952_v46 = vld [vmem:[%s3669_s8 + $0x18c] ss:$16 sps:$4 sm:$0xff]   ;;  %v2954_v49 = vld [vmem:[%s3669_s8 + $0x180] ss:$16 sps:$4 sm:$0xff]   ;;  %v2955_v50 = vld [vmem:[%s3669_s8 + $0x188] ss:$16 sps:$4 sm:$0xff]  }
  0x93   : > { %v439_v47 = vld [vmem:[%s3662_s20 + $0x8] sm:$0xff]  ;;  %v441_v48 = vld [vmem:[%s3662_s20 + $0x18] sm:$0xff]  ;;  %v2956_v52 = vld [vmem:[%s3669_s8 + $0x164] ss:$16 sps:$4 sm:$0xff]   ;;  %p2554_p7 = scmp.ne.s32.totalorder %s3448_s30, 3 }
  0x94   : > { %v443_v51 = vpack.c.bf16 %v441_v48, %v439_v47  ;;  %v2958_v53 = vld [vmem:[%s3669_s8 + $0x16c] ss:$16 sps:$4 sm:$0xff]   ;;  %v2960_v54 = vld [vmem:[%s3669_s8 + $0x160] ss:$16 sps:$4 sm:$0xff]   ;;  %v2961_v55 = vld [vmem:[%s3669_s8 + $0x168] ss:$16 sps:$4 sm:$0xff]  }
  0x95   : > { %845 = vmatpush1.bf16.msra.mxu0 %v2912_v19  ;;  %888 = vmatpush1.bf16.msra.mxu1 %v2913_v20  ;;  %v2962_v56 = vld [vmem:[%s3669_s8 + $0x144] ss:$16 sps:$4 sm:$0xff]   ;;  %v2964_v57 = vld [vmem:[%s3669_s8 + $0x14c] ss:$16 sps:$4 sm:$0xff]   ;;  %v2966_v58 = vld [vmem:[%s3669_s8 + $0x140] ss:$16 sps:$4 sm:$0xff]  }
  0x96   : > { %846 = vmatprep.subr.bf16.mxu0 %v2914_v21  ;;  %889 = vmatprep.subr.bf16.mxu1 %v2916_v22  ;;  %v2967_v59 = vld [vmem:[%s3669_s8 + $0x148] ss:$16 sps:$4 sm:$0xff]   ;;  %v2968_v60 = vld [vmem:[%s3669_s8 + $0x124] ss:$16 sps:$4 sm:$0xff]   ;;  %v2970_v61 = vld [vmem:[%s3669_s8 + $0x12c] ss:$16 sps:$4 sm:$0xff]  }
  0x97   : > { %868 = vmatprep.mubr.bf16.mxu0 %v443_v51  ;;  %911 = vmatprep.mubr.bf16.mxu1 %v443_v51  ;;  %v2972_v62 = vld [vmem:[%s3669_s8 + $0x120] ss:$16 sps:$4 sm:$0xff]   ;;  %v2973_v63 = vld [vmem:[%s3669_s8 + $0x128] ss:$16 sps:$4 sm:$0xff]   ;;  %v2974_v0 = vld [vmem:[%s3669_s8 + $0x104] ss:$16 sps:$4 sm:$0xff]  }
  0x98   : > { %v2976_v1 = vld [vmem:[%s3669_s8 + $0x10c] ss:$16 sps:$4 sm:$0xff]   ;;  %v2978_v2 = vld [vmem:[%s3669_s8 + $0x100] ss:$16 sps:$4 sm:$0xff]   ;;  %v2979_v3 = vld [vmem:[%s3669_s8 + $0x108] ss:$16 sps:$4 sm:$0xff]  }
  0x99   : > { %847 = vmatpush1.bf16.msra.mxu0 %v2918_v23  ;;  %890 = vmatpush1.bf16.msra.mxu1 %v2919_v24  ;;  %v438_v4 = vld [vmem:[%s3662_s20] sm:$0xff]  ;;  %v440_v5 = vld [vmem:[%s3662_s20 + $0x10] sm:$0xff] }
  0x9a   : > { %848 = vmatprep.subr.bf16.mxu0 %v2920_v25  ;;  %891 = vmatprep.subr.bf16.mxu1 %v2922_v26  ;;  %v442_v6 = vpack.c.bf16 %v440_v5, %v438_v4  ;;  %v444_v7 = vld [vmem:[#allocation11] sm:$0xff]  ;;  %v446_v8 = vld [vmem:[#allocation11 + $0x10] sm:$0xff]  ;;  %v445_v11 = vld [vmem:[#allocation11 + $0x8] sm:$0xff] }
  0x9b   : > { %v447_v12 = vld [vmem:[#allocation11 + $0x18] sm:$0xff]  ;;  %v448_v17 = vld [vmem:[#allocation11 + $0x20] sm:$0xff]  ;;  %v450_v18 = vld [vmem:[#allocation11 + $0x30] sm:$0xff] }
  0x9c   : > { %v449_v23 = vld [vmem:[#allocation11 + $0x28] sm:$0xff]  ;;  %v451_v24 = vld [vmem:[#allocation11 + $0x38] sm:$0xff] }
  0x9d   : > { %849 = vmatpush1.bf16.msra.mxu0 %v2924_v27  ;;  %892 = vmatpush1.bf16.msra.mxu1 %v2925_v28 }
  0x9e   : > { %850 = vmatprep.subr.bf16.mxu0 %v2926_v29  ;;  %893 = vmatprep.subr.bf16.mxu1 %v2928_v30 }
  0xa1   : > { %851 = vmatpush1.bf16.msra.mxu0 %v2930_v31  ;;  %894 = vmatpush1.bf16.msra.mxu1 %v2931_v32 }
  0xa2   : > { %852 = vmatprep.subr.bf16.mxu0 %v2932_v33  ;;  %895 = vmatprep.subr.bf16.mxu1 %v2934_v34 }
  0xa5   : > { %853 = vmatpush2.bf16.msra.mxu0 %v2936_v35  ;;  %896 = vmatpush2.bf16.msra.mxu1 %v2937_v36 }
  0xa6   : > { %854 = vmatprep.subr.bf16.mxu0 %v2938_v37  ;;  %897 = vmatprep.subr.bf16.mxu1 %v2940_v38 }
  0xa9   : > { %855 = vmatpush2.bf16.msra.mxu0 %v2942_v39  ;;  %898 = vmatpush2.bf16.msra.mxu1 %v2943_v40 }
  0xaa   : > { %856 = vmatprep.subr.bf16.mxu0 %v2944_v41  ;;  %899 = vmatprep.subr.bf16.mxu1 %v2946_v42 }
  0xad   : > { %857 = vmatpush2.bf16.msra.mxu0 %v2948_v43  ;;  %900 = vmatpush2.bf16.msra.mxu1 %v2949_v44 }
  0xae   : > { %858 = vmatprep.subr.bf16.mxu0 %v2950_v45  ;;  %901 = vmatprep.subr.bf16.mxu1 %v2952_v46 }
  0xb1   : > { %859 = vmatpush2.bf16.msra.mxu0 %v2954_v49  ;;  %902 = vmatpush2.bf16.msra.mxu1 %v2955_v50 }
  0xb2   : > { %860 = vmatprep.subr.bf16.mxu0 %v2956_v52  ;;  %903 = vmatprep.subr.bf16.mxu1 %v2958_v53 }
  0xb5   : > { %861 = vmatpush2.bf16.msra.mxu0 %v2960_v54  ;;  %904 = vmatpush2.bf16.msra.mxu1 %v2961_v55 }
  0xb6   : > { %862 = vmatprep.subr.bf16.mxu0 %v2962_v56  ;;  %905 = vmatprep.subr.bf16.mxu1 %v2964_v57 }
  0xb9   : > { %863 = vmatpush2.bf16.msra.mxu0 %v2966_v58  ;;  %906 = vmatpush2.bf16.msra.mxu1 %v2967_v59 }
  0xba   : > { %864 = vmatprep.subr.bf16.mxu0 %v2968_v60  ;;  %907 = vmatprep.subr.bf16.mxu1 %v2970_v61 }
  0xbd   : > { %865 = vmatpush2.bf16.msra.mxu0 %v2972_v62  ;;  %908 = vmatpush2.bf16.msra.mxu1 %v2973_v63 }
  0xbe   : > { %866 = vmatprep.subr.bf16.mxu0 %v2974_v0  ;;  %909 = vmatprep.subr.bf16.mxu1 %v2976_v1 }
  0xc1   : > { %867 = vmatpush2.bf16.msra.mxu0 %v2978_v2  ;;  %910 = vmatpush2.bf16.msra.mxu1 %v2979_v3 }
  0xc4   : > { %869 = vmatmul.mubr.bf16.vlgmr.msra.gmra.mxu0 %v442_v6  ;;  %912 = vmatmul.mubr.bf16.vlgmr.msra.gmra.mxu1 %v442_v6 }
 0x184   : > { %v870_v9 = vpop.f32.mrf.mxu0  ;;  %v913_v10 = vpop.f32.mrf.mxu1 }
 0x185   : > { %v922_v13 = vadd.f32 %v870_v9, %v444_v7  ;;  %v924_v14 = vadd.f32 %v913_v10, %v446_v8 }
 0x186   : > { %v872_v15 = vpop.f32.mrf.mxu0  ;;  %v915_v16 = vpop.f32.mrf.mxu1 }
 0x187   : > { %930 = vst [vmem:[#allocation11] sm:$0xff] %v922_v13  ;;  %932 = vst [vmem:[#allocation11 + $0x10] sm:$0xff] %v924_v14  ;;  %v923_v19 = vadd.f32 %v872_v15, %v445_v11  ;;  %v925_v20 = vadd.f32 %v915_v16, %v447_v12 }
 0x188   : > { %v874_v21 = vpop.f32.mrf.mxu0  ;;  %v917_v22 = vpop.f32.mrf.mxu1 }
 0x189   : > { %931 = vst [vmem:[#allocation11 + $0x8] sm:$0xff] %v923_v19  ;;  %933 = vst [vmem:[#allocation11 + $0x18] sm:$0xff] %v925_v20  ;;  %v926_v25 = vadd.f32 %v874_v21, %v448_v17  ;;  %v928_v26 = vadd.f32 %v917_v22, %v450_v18  ;;  %941 = sbr.rel (%p2554_p7) target bundleno = 939 (0x3ab), region = 76 }
 0x18a   : > { %v876_v27 = vpop.f32.mrf.mxu0  ;;  %v919_v28 = vpop.f32.mrf.mxu1 }
 0x18b   : > { %934 = vst [vmem:[#allocation11 + $0x20] sm:$0xff] %v926_v25  ;;  %936 = vst [vmem:[#allocation11 + $0x30] sm:$0xff] %v928_v26  ;;  %v927_v29 = vadd.f32 %v876_v27, %v449_v23  ;;  %v929_v30 = vadd.f32 %v919_v28, %v451_v24 }
 0x18d   : > { %935 = vst [vmem:[#allocation11 + $0x28] sm:$0xff] %v927_v29  ;;  %937 = vst [vmem:[#allocation11 + $0x38] sm:$0xff] %v929_v30 }
 0x18e   : > { %v2980_v31 = vld [vmem:[#allocation8 + $0xe4] ss:$16 sps:$4 sm:$0xff]   ;;  %v2984_v33 = vld [vmem:[#allocation8 + $0xe0] ss:$16 sps:$4 sm:$0xff]   ;;  %v952_v3 = vlaneseq  ;;  %v950_v25 = vld [vmem:[#allocation7] sm:$0xf] }
 0x18f   : > { %v2982_v32 = vld [vmem:[#allocation8 + $0x2e4] ss:$16 sps:$4 sm:$0xff]   ;;  %1782 = vmatprep.subr.bf16.mxu0 %v2980_v31  ;;  %v2985_v34 = vld [vmem:[#allocation8 + $0x2e0] ss:$16 sps:$4 sm:$0xff]  }
 0x190   : > { %1825 = vmatprep.subr.bf16.mxu1 %v2982_v32  ;;  %v2986_v35 = vld [vmem:[#allocation8 + $0xc4] ss:$16 sps:$4 sm:$0xff]   ;;  %1783 = vmatpush1.bf16.msra.mxu0 %v2984_v33  ;;  %v2990_v37 = vld [vmem:[#allocation8 + $0xc0] ss:$16 sps:$4 sm:$0xff]   ;;  %v3753_v7 = vshrl.u32 %v952_v3, 7  ;;  %v943_v21 = vld [vmem:[#allocation11 + $0x8] sm:$0xff] }
 0x191   : > { %1826 = vmatpush1.bf16.msra.mxu1 %v2985_v34  ;;  %v2988_v36 = vld [vmem:[#allocation8 + $0x2c4] ss:$16 sps:$4 sm:$0xff]   ;;  %1784 = vmatprep.subr.bf16.mxu0 %v2986_v35  ;;  %v2991_v38 = vld [vmem:[#allocation8 + $0x2c0] ss:$16 sps:$4 sm:$0xff]   ;;  %v945_v26 = vld [vmem:[#allocation11 + $0x18] sm:$0xff] }
 0x192   : > { %1827 = vmatprep.subr.bf16.mxu1 %v2988_v36  ;;  %v2992_v39 = vld [vmem:[#allocation8 + $0xa4] ss:$16 sps:$4 sm:$0xff]   ;;  %v2996_v41 = vld [vmem:[#allocation8 + $0xa0] ss:$16 sps:$4 sm:$0xff]   ;;  %v958_v13 = vsub.s32 1, %v3753_v7  ;;  %v966_v15 = vsub.s32 3, %v3753_v7 }
 0x193   : > { %v2994_v40 = vld [vmem:[#allocation8 + $0x2a4] ss:$16 sps:$4 sm:$0xff]   ;;  %v2997_v42 = vld [vmem:[#allocation8 + $0x2a0] ss:$16 sps:$4 sm:$0xff]   ;;  %v954_v16 = vsub.s32 0, %v3753_v7  ;;  %v962_v18 = vsub.s32 2, %v3753_v7 }
 0x194   : > { %1785 = vmatpush1.bf16.msra.mxu0 %v2990_v37  ;;  %v2998_v43 = vld [vmem:[#allocation8 + $0x84] ss:$16 sps:$4 sm:$0xff]   ;;  %v3002_v45 = vld [vmem:[#allocation8 + $0x80] ss:$16 sps:$4 sm:$0xff]   ;;  %v947_v24 = vld [vmem:[#allocation11 + $0x28] sm:$0xff]  ;;  %v959_v27 = vrot.slane %v950_v25, %v958_v13  ;;  %v967_v29 = vrot.slane %v950_v25, %v966_v15 }
 0x195   : > { %1828 = vmatpush1.bf16.msra.mxu1 %v2991_v38  ;;  %1786 = vmatprep.subr.bf16.mxu0 %v2992_v39  ;;  %v3000_v44 = vld [vmem:[#allocation8 + $0x284] ss:$16 sps:$4 sm:$0xff]   ;;  %v3003_v46 = vld [vmem:[#allocation8 + $0x280] ss:$16 sps:$4 sm:$0xff]   ;;  %v949_v28 = vld [vmem:[#allocation11 + $0x38] sm:$0xff]  ;;  %v955_v32 = vrot.slane %v950_v25, %v954_v16  ;;  %v963_v35 = vrot.slane %v950_v25, %v962_v18 }
 0x196   : > { %1829 = vmatprep.subr.bf16.mxu1 %v2994_v40  ;;  %v3004_v47 = vld [vmem:[#allocation8 + $0x64] ss:$16 sps:$4 sm:$0xff]   ;;  %v3008_v49 = vld [vmem:[#allocation8 + $0x60] ss:$16 sps:$4 sm:$0xff]   ;;  %v973_v36 = vadd.f32 %v959_v27, %v943_v21  ;;  %v977_v37 = vadd.f32 %v959_v27, %v947_v24  ;;  %v975_v38 = vadd.f32 %v967_v29, %v945_v26  ;;  %v979_v39 = vadd.f32 %v967_v29, %v949_v28  ;;  %v3087_v3 = vld [vmem:[#allocation8 + $0x2cc] ss:$16 sps:$4 sm:$0xff]  }
 0x197   : > { %v3006_v48 = vld [vmem:[#allocation8 + $0x264] ss:$16 sps:$4 sm:$0xff]   ;;  %v3009_v50 = vld [vmem:[#allocation8 + $0x260] ss:$16 sps:$4 sm:$0xff]   ;;  %v3100_v21 = vld [vmem:[#allocation8 + $0x68] ss:$16 sps:$4 sm:$0xff]  }
 0x198   : > { %1787 = vmatpush1.bf16.msra.mxu0 %v2996_v41  ;;  %v3010_v51 = vld [vmem:[#allocation8 + $0x44] ss:$16 sps:$4 sm:$0xff]   ;;  %v3014_v53 = vld [vmem:[#allocation8 + $0x40] ss:$16 sps:$4 sm:$0xff]   ;;  %981 = vst [vmem:[#allocation11 + $0x8] sm:$0xff] %v973_v36  ;;  %985 = vst [vmem:[#allocation11 + $0x28] sm:$0xff] %v977_v37 }
 0x199   : > { %1830 = vmatpush1.bf16.msra.mxu1 %v2997_v42  ;;  %1788 = vmatprep.subr.bf16.mxu0 %v2998_v43  ;;  %v3012_v52 = vld [vmem:[#allocation8 + $0x244] ss:$16 sps:$4 sm:$0xff]   ;;  %v3015_v54 = vld [vmem:[#allocation8 + $0x240] ss:$16 sps:$4 sm:$0xff]   ;;  %983 = vst [vmem:[#allocation11 + $0x18] sm:$0xff] %v975_v38  ;;  %987 = vst [vmem:[#allocation11 + $0x38] sm:$0xff] %v979_v39 }
 0x19a   : > { %1831 = vmatprep.subr.bf16.mxu1 %v3000_v44  ;;  %v3016_v55 = vld [vmem:[#allocation8 + $0x24] ss:$16 sps:$4 sm:$0xff]   ;;  %v3020_v57 = vld [vmem:[#allocation8 + $0x20] ss:$16 sps:$4 sm:$0xff]   ;;  %v3111_v24 = vld [vmem:[#allocation8 + $0x24c] ss:$16 sps:$4 sm:$0xff]  }
 0x19b   : > { %v3018_v56 = vld [vmem:[#allocation8 + $0x224] ss:$16 sps:$4 sm:$0xff]   ;;  %v3021_v58 = vld [vmem:[#allocation8 + $0x220] ss:$16 sps:$4 sm:$0xff]   ;;  %v3106_v25 = vld [vmem:[#allocation8 + $0x48] ss:$16 sps:$4 sm:$0xff]  }
 0x19c   : > { %1789 = vmatpush1.bf16.msra.mxu0 %v3002_v45  ;;  %v3022_v59 = vld [vmem:[#allocation8 + $0x4] ss:$16 sps:$4 sm:$0xff]   ;;  %v3026_v61 = vld [vmem:[#allocation8] ss:$16 sps:$4 sm:$0xff]   ;;  %v3109_v26 = vld [vmem:[#allocation8 + $0x248] ss:$16 sps:$4 sm:$0xff]  }
 0x19d   : > { %1832 = vmatpush1.bf16.msra.mxu1 %v3003_v46  ;;  %1790 = vmatprep.subr.bf16.mxu0 %v3004_v47  ;;  %v3024_v60 = vld [vmem:[#allocation8 + $0x204] ss:$16 sps:$4 sm:$0xff]   ;;  %v3027_v62 = vld [vmem:[#allocation8 + $0x200] ss:$16 sps:$4 sm:$0xff]   ;;  %v989_v46 = vpack.c.bf16 %v977_v37, %v973_v36  ;;  %v991_v47 = vpack.c.bf16 %v979_v39, %v975_v38  ;;  %v3114_v27 = vld [vmem:[#allocation8 + $0x2c] ss:$16 sps:$4 sm:$0xff]  }
 0x19e   : > { %1833 = vmatprep.subr.bf16.mxu1 %v3006_v48  ;;  %v3028_v63 = vld [vmem:[#allocation8 + $0x1e4] ss:$16 sps:$4 sm:$0xff]   ;;  %v3032_v1 = vld [vmem:[#allocation8 + $0x1e0] ss:$16 sps:$4 sm:$0xff]   ;;  %v3117_v28 = vld [vmem:[#allocation8 + $0x22c] ss:$16 sps:$4 sm:$0xff]  }
 0x19f   : > { %v3030_v0 = vld [vmem:[#allocation8 + $0x3e4] ss:$16 sps:$4 sm:$0xff]   ;;  %v3033_v2 = vld [vmem:[#allocation8 + $0x3e0] ss:$16 sps:$4 sm:$0xff]   ;;  %1814 = vmatprep.mubr.bf16.mxu0 %v989_v46  ;;  %1857 = vmatprep.mubr.bf16.mxu1 %v991_v47  ;;  %v3112_v29 = vld [vmem:[#allocation8 + $0x28] ss:$16 sps:$4 sm:$0xff]  }
 0x1a0   : > { %1791 = vmatpush1.bf16.msra.mxu0 %v3008_v49  ;;  %v3034_v4 = vld [vmem:[#allocation8 + $0x1c4] ss:$16 sps:$4 sm:$0xff]   ;;  %v3038_v6 = vld [vmem:[#allocation8 + $0x1c0] ss:$16 sps:$4 sm:$0xff]   ;;  %v3129_v36 = vld [vmem:[#allocation8 + $0x3ec] ss:$16 sps:$4 sm:$0xff]  }
 0x1a1   : > { %1834 = vmatpush1.bf16.msra.mxu1 %v3009_v50  ;;  %1792 = vmatprep.subr.bf16.mxu0 %v3010_v51  ;;  %v3036_v5 = vld [vmem:[#allocation8 + $0x3c4] ss:$16 sps:$4 sm:$0xff]   ;;  %v3039_v8 = vld [vmem:[#allocation8 + $0x3c0] ss:$16 sps:$4 sm:$0xff]   ;;  %v3124_v37 = vld [vmem:[#allocation8 + $0x1e8] ss:$16 sps:$4 sm:$0xff]  }
 0x1a2   : > { %1835 = vmatprep.subr.bf16.mxu1 %v3012_v52  ;;  %v3040_v9 = vld [vmem:[#allocation8 + $0x1a4] ss:$16 sps:$4 sm:$0xff]   ;;  %v3044_v11 = vld [vmem:[#allocation8 + $0x1a0] ss:$16 sps:$4 sm:$0xff]   ;;  %v3127_v38 = vld [vmem:[#allocation8 + $0x3e8] ss:$16 sps:$4 sm:$0xff]  }
 0x1a3   : > { %v3042_v10 = vld [vmem:[#allocation8 + $0x3a4] ss:$16 sps:$4 sm:$0xff]   ;;  %v3045_v12 = vld [vmem:[#allocation8 + $0x3a0] ss:$16 sps:$4 sm:$0xff]   ;;  %v3132_v39 = vld [vmem:[#allocation8 + $0x1cc] ss:$16 sps:$4 sm:$0xff]  }
 0x1a4   : > { %1793 = vmatpush1.bf16.msra.mxu0 %v3014_v53  ;;  %v3046_v14 = vld [vmem:[#allocation8 + $0x184] ss:$16 sps:$4 sm:$0xff]   ;;  %v3050_v19 = vld [vmem:[#allocation8 + $0x180] ss:$16 sps:$4 sm:$0xff]  }
 0x1a5   : > { %1836 = vmatpush1.bf16.msra.mxu1 %v3015_v54  ;;  %1794 = vmatprep.subr.bf16.mxu0 %v3016_v55  ;;  %v3048_v17 = vld [vmem:[#allocation8 + $0x384] ss:$16 sps:$4 sm:$0xff]   ;;  %v3051_v20 = vld [vmem:[#allocation8 + $0x380] ss:$16 sps:$4 sm:$0xff]  }
 0x1a6   : > { %1837 = vmatprep.subr.bf16.mxu1 %v3018_v56  ;;  %v3052_v22 = vld [vmem:[#allocation8 + $0x164] ss:$16 sps:$4 sm:$0xff]   ;;  %v3056_v40 = vld [vmem:[#allocation8 + $0x160] ss:$16 sps:$4 sm:$0xff]  }
 0x1a7   : > { %v3054_v23 = vld [vmem:[#allocation8 + $0x364] ss:$16 sps:$4 sm:$0xff]   ;;  %v3057_v45 = vld [vmem:[#allocation8 + $0x360] ss:$16 sps:$4 sm:$0xff]  }
 0x1a8   : > { %1795 = vmatpush1.bf16.msra.mxu0 %v3020_v57  ;;  %v942_v30 = vld [vmem:[#allocation11] sm:$0xff]  ;;  %v944_v33 = vld [vmem:[#allocation11 + $0x10] sm:$0xff] }
 0x1a9   : > { %1838 = vmatpush1.bf16.msra.mxu1 %v3021_v58  ;;  %1796 = vmatprep.subr.bf16.mxu0 %v3022_v59  ;;  %v946_v31 = vld [vmem:[#allocation11 + $0x20] sm:$0xff]  ;;  %v948_v34 = vld [vmem:[#allocation11 + $0x30] sm:$0xff]  ;;  %v972_v41 = vadd.f32 %v955_v32, %v942_v30  ;;  %v974_v43 = vadd.f32 %v963_v35, %v944_v33  ;;  %v3115_v30 = vld [vmem:[#allocation8 + $0x228] ss:$16 sps:$4 sm:$0xff]  }
 0x1aa   : > { %1839 = vmatprep.subr.bf16.mxu1 %v3024_v60  ;;  %v976_v42 = vadd.f32 %v955_v32, %v946_v31  ;;  %v978_v44 = vadd.f32 %v963_v35, %v948_v34  ;;  %v3058_v48 = vld [vmem:[#allocation8 + $0x144] ss:$16 sps:$4 sm:$0xff]   ;;  %v3062_v50 = vld [vmem:[#allocation8 + $0x140] ss:$16 sps:$4 sm:$0xff]   ;;  %v3078_v60 = vld [vmem:[#allocation8 + $0xec] ss:$16 sps:$4 sm:$0xff]  }
 0x1ab   : > { %v3060_v49 = vld [vmem:[#allocation8 + $0x344] ss:$16 sps:$4 sm:$0xff]   ;;  %980 = vst [vmem:[#allocation11] sm:$0xff] %v972_v41  ;;  %982 = vst [vmem:[#allocation11 + $0x10] sm:$0xff] %v974_v43  ;;  %v3063_v51 = vld [vmem:[#allocation8 + $0x340] ss:$16 sps:$4 sm:$0xff]  }
 0x1ac   : > { %1797 = vmatpush1.bf16.msra.mxu0 %v3026_v61  ;;  %984 = vst [vmem:[#allocation11 + $0x20] sm:$0xff] %v976_v42  ;;  %986 = vst [vmem:[#allocation11 + $0x30] sm:$0xff] %v978_v44  ;;  %v3064_v52 = vld [vmem:[#allocation8 + $0x124] ss:$16 sps:$4 sm:$0xff]   ;;  %v3068_v54 = vld [vmem:[#allocation8 + $0x120] ss:$16 sps:$4 sm:$0xff]  }
 0x1ad   : > { %1840 = vmatpush1.bf16.msra.mxu1 %v3027_v62  ;;  %1798 = vmatprep.subr.bf16.mxu0 %v3028_v63  ;;  %v3066_v53 = vld [vmem:[#allocation8 + $0x324] ss:$16 sps:$4 sm:$0xff]   ;;  %v3069_v55 = vld [vmem:[#allocation8 + $0x320] ss:$16 sps:$4 sm:$0xff]   ;;  %v3081_v61 = vld [vmem:[#allocation8 + $0x2ec] ss:$16 sps:$4 sm:$0xff]   ;;  %v3767_v62 = vpack.c.bf16 %v976_v42, %v972_v41  ;;  %v3769_v63 = vpack.c.bf16 %v978_v44, %v974_v43 }
 0x1ae   : > { %1841 = vmatprep.subr.bf16.mxu1 %v3030_v0  ;;  %v3070_v56 = vld [vmem:[#allocation8 + $0x104] ss:$16 sps:$4 sm:$0xff]   ;;  %v3074_v58 = vld [vmem:[#allocation8 + $0x100] ss:$16 sps:$4 sm:$0xff]   ;;  %v3076_v0 = vld [vmem:[#allocation8 + $0xe8] ss:$16 sps:$4 sm:$0xff]  }
 0x1af   : > { %v3072_v57 = vld [vmem:[#allocation8 + $0x304] ss:$16 sps:$4 sm:$0xff]   ;;  %v3075_v59 = vld [vmem:[#allocation8 + $0x300] ss:$16 sps:$4 sm:$0xff]   ;;  %v3120_v31 = vld [vmem:[#allocation8 + $0xc] ss:$16 sps:$4 sm:$0xff]  }
 0x1b0   : > { %1799 = vmatpush2.bf16.msra.mxu0 %v3032_v1  ;;  %v3079_v1 = vld [vmem:[#allocation8 + $0x2e8] ss:$16 sps:$4 sm:$0xff]   ;;  %v3123_v32 = vld [vmem:[#allocation8 + $0x20c] ss:$16 sps:$4 sm:$0xff]  }
 0x1b1   : > { %1842 = vmatpush2.bf16.msra.mxu1 %v3033_v2  ;;  %1800 = vmatprep.subr.bf16.mxu0 %v3034_v4  ;;  %v3084_v2 = vld [vmem:[#allocation8 + $0xcc] ss:$16 sps:$4 sm:$0xff]   ;;  %v3082_v4 = vld [vmem:[#allocation8 + $0xc8] ss:$16 sps:$4 sm:$0xff]  }
 0x1b2   : > { %1843 = vmatprep.subr.bf16.mxu1 %v3036_v5  ;;  %v3085_v5 = vld [vmem:[#allocation8 + $0x2c8] ss:$16 sps:$4 sm:$0xff]   ;;  %v3126_v35 = vld [vmem:[#allocation8 + $0x1ec] ss:$16 sps:$4 sm:$0xff]  }
 0x1b3   : > { %v3118_v33 = vld [vmem:[#allocation8 + $0x8] ss:$16 sps:$4 sm:$0xff]   ;;  %v3138_v43 = vld [vmem:[#allocation8 + $0x1ac] ss:$16 sps:$4 sm:$0xff]  }
 0x1b4   : > { %1801 = vmatpush2.bf16.msra.mxu0 %v3038_v6  ;;  %v3090_v6 = vld [vmem:[#allocation8 + $0xac] ss:$16 sps:$4 sm:$0xff]   ;;  %v3121_v34 = vld [vmem:[#allocation8 + $0x208] ss:$16 sps:$4 sm:$0xff]  }
 0x1b5   : > { %1844 = vmatpush2.bf16.msra.mxu1 %v3039_v8  ;;  %1802 = vmatprep.subr.bf16.mxu0 %v3040_v9  ;;  %v3093_v8 = vld [vmem:[#allocation8 + $0x2ac] ss:$16 sps:$4 sm:$0xff]   ;;  %v3088_v9 = vld [vmem:[#allocation8 + $0xa8] ss:$16 sps:$4 sm:$0xff]  }
 0x1b6   : > { %1845 = vmatprep.subr.bf16.mxu1 %v3042_v10  ;;  %v3091_v10 = vld [vmem:[#allocation8 + $0x2a8] ss:$16 sps:$4 sm:$0xff]   ;;  %v3141_v44 = vld [vmem:[#allocation8 + $0x3ac] ss:$16 sps:$4 sm:$0xff]  }
 0x1b7   : > { %v3130_v41 = vld [vmem:[#allocation8 + $0x1c8] ss:$16 sps:$4 sm:$0xff]  }
 0x1b8   : > { %1803 = vmatpush2.bf16.msra.mxu0 %v3044_v11  ;;  %v3096_v11 = vld [vmem:[#allocation8 + $0x8c] ss:$16 sps:$4 sm:$0xff]   ;;  %v3133_v42 = vld [vmem:[#allocation8 + $0x3c8] ss:$16 sps:$4 sm:$0xff]  }
 0x1b9   : > { %1846 = vmatpush2.bf16.msra.mxu1 %v3045_v12  ;;  %1804 = vmatprep.subr.bf16.mxu0 %v3046_v14  ;;  %v3099_v12 = vld [vmem:[#allocation8 + $0x28c] ss:$16 sps:$4 sm:$0xff]   ;;  %v3094_v14 = vld [vmem:[#allocation8 + $0x88] ss:$16 sps:$4 sm:$0xff]  }
 0x1ba   : > { %1847 = vmatprep.subr.bf16.mxu1 %v3048_v17  ;;  %v3097_v17 = vld [vmem:[#allocation8 + $0x288] ss:$16 sps:$4 sm:$0xff]  }
 0x1bc   : > { %1805 = vmatpush2.bf16.msra.mxu0 %v3050_v19  ;;  %v3102_v19 = vld [vmem:[#allocation8 + $0x6c] ss:$16 sps:$4 sm:$0xff]  }
 0x1bd   : > { %1848 = vmatpush2.bf16.msra.mxu1 %v3051_v20  ;;  %1806 = vmatprep.subr.bf16.mxu0 %v3052_v22  ;;  %v3105_v20 = vld [vmem:[#allocation8 + $0x26c] ss:$16 sps:$4 sm:$0xff]   ;;  %v3103_v22 = vld [vmem:[#allocation8 + $0x268] ss:$16 sps:$4 sm:$0xff]  }
 0x1be   : > { %1849 = vmatprep.subr.bf16.mxu1 %v3054_v23  ;;  %v3108_v23 = vld [vmem:[#allocation8 + $0x4c] ss:$16 sps:$4 sm:$0xff]  }
 0x1c0   : > { %1807 = vmatpush2.bf16.msra.mxu0 %v3056_v40  ;;  %v3135_v40 = vld [vmem:[#allocation8 + $0x3cc] ss:$16 sps:$4 sm:$0xff]  }
 0x1c1   : > { %1850 = vmatpush2.bf16.msra.mxu1 %v3057_v45  ;;  %1808 = vmatprep.subr.bf16.mxu0 %v3058_v48  ;;  %v3136_v45 = vld [vmem:[#allocation8 + $0x1a8] ss:$16 sps:$4 sm:$0xff]   ;;  %v3147_v48 = vld [vmem:[#allocation8 + $0x38c] ss:$16 sps:$4 sm:$0xff]  }
 0x1c2   : > { %1851 = vmatprep.subr.bf16.mxu1 %v3060_v49  ;;  %v3142_v49 = vld [vmem:[#allocation8 + $0x188] ss:$16 sps:$4 sm:$0xff]  }
 0x1c4   : > { %1809 = vmatpush2.bf16.msra.mxu0 %v3062_v50  ;;  %v3145_v50 = vld [vmem:[#allocation8 + $0x388] ss:$16 sps:$4 sm:$0xff]  }
 0x1c5   : > { %1852 = vmatpush2.bf16.msra.mxu1 %v3063_v51  ;;  %1810 = vmatprep.subr.bf16.mxu0 %v3064_v52  ;;  %v3150_v51 = vld [vmem:[#allocation8 + $0x16c] ss:$16 sps:$4 sm:$0xff]  }
 0x1c6   : > { %1853 = vmatprep.subr.bf16.mxu1 %v3066_v53  ;;  %v3153_v52 = vld [vmem:[#allocation8 + $0x36c] ss:$16 sps:$4 sm:$0xff]   ;;  %v3148_v53 = vld [vmem:[#allocation8 + $0x168] ss:$16 sps:$4 sm:$0xff]  }
 0x1c8   : > { %1811 = vmatpush2.bf16.msra.mxu0 %v3068_v54  ;;  %v3151_v54 = vld [vmem:[#allocation8 + $0x368] ss:$16 sps:$4 sm:$0xff]  }
 0x1c9   : > { %1854 = vmatpush2.bf16.msra.mxu1 %v3069_v55  ;;  %1812 = vmatprep.subr.bf16.mxu0 %v3070_v56  ;;  %v3156_v55 = vld [vmem:[#allocation8 + $0x14c] ss:$16 sps:$4 sm:$0xff]  }
 0x1ca   : > { %1855 = vmatprep.subr.bf16.mxu1 %v3072_v57  ;;  %v3159_v56 = vld [vmem:[#allocation8 + $0x34c] ss:$16 sps:$4 sm:$0xff]   ;;  %v3154_v57 = vld [vmem:[#allocation8 + $0x148] ss:$16 sps:$4 sm:$0xff]  }
 0x1cc   : > { %1813 = vmatpush2.bf16.msra.mxu0 %v3074_v58  ;;  %v3157_v58 = vld [vmem:[#allocation8 + $0x348] ss:$16 sps:$4 sm:$0xff]  }
 0x1cd   : > { %1856 = vmatpush2.bf16.msra.mxu1 %v3075_v59  ;;  %1868 = vmatprep.subr.bf16.mxu0 %v3078_v60  ;;  %v3162_v59 = vld [vmem:[#allocation8 + $0x12c] ss:$16 sps:$4 sm:$0xff]  }
 0x1ce   : > { %1911 = vmatprep.subr.bf16.mxu1 %v3081_v61  ;;  %v3165_v60 = vld [vmem:[#allocation8 + $0x32c] ss:$16 sps:$4 sm:$0xff]   ;;  %v3160_v61 = vld [vmem:[#allocation8 + $0x128] ss:$16 sps:$4 sm:$0xff]  }
 0x1cf   : > { %1815 = vmatmul.mubr.bf16.vlgmr.msra.gmra.mxu0 %v3767_v62 }
 0x1d0   : > { %1858 = vmatmul.mubr.bf16.vlgmr.msra.gmra.mxu1 %v3769_v63  ;;  %1869 = vmatpush1.bf16.msra.mxu0 %v3076_v0  ;;  %v3163_v0 = vld [vmem:[#allocation8 + $0x328] ss:$16 sps:$4 sm:$0xff]  }
 0x1d1   : > { %1912 = vmatpush1.bf16.msra.mxu1 %v3079_v1  ;;  %1870 = vmatprep.subr.bf16.mxu0 %v3084_v2  ;;  %v3168_v1 = vld [vmem:[#allocation8 + $0x10c] ss:$16 sps:$4 sm:$0xff]  }
 0x1d2   : > { %1913 = vmatprep.subr.bf16.mxu1 %v3087_v3  ;;  %1900 = vmatprep.mubr.bf16.mxu0 %v989_v46  ;;  %v3139_v46 = vld [vmem:[#allocation8 + $0x3a8] ss:$16 sps:$4 sm:$0xff]   ;;  %v3171_v2 = vld [vmem:[#allocation8 + $0x30c] ss:$16 sps:$4 sm:$0xff]  }
 0x1d3   : > { %1943 = vmatprep.mubr.bf16.mxu1 %v991_v47  ;;  %v3144_v47 = vld [vmem:[#allocation8 + $0x18c] ss:$16 sps:$4 sm:$0xff]   ;;  %v3166_v3 = vld [vmem:[#allocation8 + $0x108] ss:$16 sps:$4 sm:$0xff]  }
 0x1d4   : > { %1871 = vmatpush1.bf16.msra.mxu0 %v3082_v4  ;;  %v3169_v4 = vld [vmem:[#allocation8 + $0x308] ss:$16 sps:$4 sm:$0xff]  }
 0x1d5   : > { %1914 = vmatpush1.bf16.msra.mxu1 %v3085_v5  ;;  %1872 = vmatprep.subr.bf16.mxu0 %v3090_v6  ;;  %v3172_v5 = vld [vmem:[#allocation10 + $0x78] sm:$0xff]  }
 0x1d6   : > { %1915 = vmatprep.subr.bf16.mxu1 %v3093_v8  ;;  %v3173_v6 = vld [vmem:[#allocation10 + $0x38] sm:$0xff]   ;;  %v3174_v8 = vld [vmem:[#allocation10 + $0x70] sm:$0xff]  }
 0x1d8   : > { %1873 = vmatpush1.bf16.msra.mxu0 %v3088_v9  ;;  %v3175_v9 = vld [vmem:[#allocation10 + $0x30] sm:$0xff]  }
 0x1d9   : > { %1916 = vmatpush1.bf16.msra.mxu1 %v3091_v10  ;;  %1874 = vmatprep.subr.bf16.mxu0 %v3096_v11  ;;  %v3176_v10 = vld [vmem:[#allocation10 + $0x68] sm:$0xff]  }
 0x1da   : > { %1917 = vmatprep.subr.bf16.mxu1 %v3099_v12  ;;  %v3177_v11 = vld [vmem:[#allocation10 + $0x28] sm:$0xff]   ;;  %v3178_v12 = vld [vmem:[#allocation10 + $0x60] sm:$0xff]  }
 0x1dc   : > { %1875 = vmatpush1.bf16.msra.mxu0 %v3094_v14  ;;  %v3179_v14 = vld [vmem:[#allocation10 + $0x20] sm:$0xff]  }
 0x1dd   : > { %1918 = vmatpush1.bf16.msra.mxu1 %v3097_v17  ;;  %1876 = vmatprep.subr.bf16.mxu0 %v3102_v19  ;;  %v3180_v17 = vld [vmem:[#allocation10 + $0x58] sm:$0xff]  }
 0x1de   : > { %1919 = vmatprep.subr.bf16.mxu1 %v3105_v20  ;;  %v3181_v19 = vld [vmem:[#allocation10 + $0x18] sm:$0xff]   ;;  %v3182_v20 = vld [vmem:[#allocation10 + $0x50] sm:$0xff]  }
 0x1e0   : > { %1877 = vmatpush1.bf16.msra.mxu0 %v3100_v21  ;;  %v3188_v21 = vld [vmem:[#allocation10 + $0xf8] sm:$0xff]  }
 0x1e1   : > { %1920 = vmatpush1.bf16.msra.mxu1 %v3103_v22  ;;  %1878 = vmatprep.subr.bf16.mxu0 %v3108_v23  ;;  %v3190_v22 = vld [vmem:[#allocation10 + $0xf0] sm:$0xff]   ;;  %v3184_v23 = vld [vmem:[#allocation10 + $0x48] sm:$0xff]  }
 0x1e2   : > { %1921 = vmatprep.subr.bf16.mxu1 %v3111_v24  ;;  %v3191_v24 = vld [vmem:[#allocation10 + $0xb0] sm:$0xff]  }
 0x1e4   : > { %1879 = vmatpush1.bf16.msra.mxu0 %v3106_v25  ;;  %v3192_v25 = vld [vmem:[#allocation10 + $0xe8] sm:$0xff]  }
 0x1e5   : > { %1922 = vmatpush1.bf16.msra.mxu1 %v3109_v26  ;;  %1880 = vmatprep.subr.bf16.mxu0 %v3114_v27  ;;  %v3185_v26 = vld [vmem:[#allocation10 + $0x8] sm:$0xff]   ;;  %v3186_v27 = vld [vmem:[#allocation10 + $0x40] sm:$0xff]  }
 0x1e6   : > { %1923 = vmatprep.subr.bf16.mxu1 %v3117_v28  ;;  %v3193_v28 = vld [vmem:[#allocation10 + $0xa8] sm:$0xff]  }
 0x1e8   : > { %1881 = vmatpush1.bf16.msra.mxu0 %v3112_v29  ;;  %v3194_v29 = vld [vmem:[#allocation10 + $0xe0] sm:$0xff]  }
 0x1e9   : > { %1924 = vmatpush1.bf16.msra.mxu1 %v3115_v30  ;;  %1882 = vmatprep.subr.bf16.mxu0 %v3120_v31  ;;  %v3187_v30 = vld [vmem:[#allocation10] sm:$0xff]  }
 0x1ea   : > { %1925 = vmatprep.subr.bf16.mxu1 %v3123_v32  ;;  %v3195_v31 = vld [vmem:[#allocation10 + $0xa0] sm:$0xff]   ;;  %v3196_v32 = vld [vmem:[#allocation10 + $0xd8] sm:$0xff]  }
 0x1ec   : > { %1883 = vmatpush1.bf16.msra.mxu0 %v3118_v33  ;;  %v3197_v33 = vld [vmem:[#allocation10 + $0x98] sm:$0xff]  }
 0x1ed   : > { %1926 = vmatpush1.bf16.msra.mxu1 %v3121_v34  ;;  %1884 = vmatprep.subr.bf16.mxu0 %v3126_v35  ;;  %v3198_v34 = vld [vmem:[#allocation10 + $0xd0] sm:$0xff]  }
 0x1ee   : > { %1927 = vmatprep.subr.bf16.mxu1 %v3129_v36  ;;  %v3199_v35 = vld [vmem:[#allocation10 + $0x90] sm:$0xff]   ;;  %v3200_v36 = vld [vmem:[#allocation10 + $0xc8] sm:$0xff]  }
 0x1f0   : > { %1885 = vmatpush2.bf16.msra.mxu0 %v3124_v37  ;;  %v3201_v37 = vld [vmem:[#allocation10 + $0x88] sm:$0xff]  }
 0x1f1   : > { %1928 = vmatpush2.bf16.msra.mxu1 %v3127_v38  ;;  %1886 = vmatprep.subr.bf16.mxu0 %v3132_v39  ;;  %v3202_v38 = vld [vmem:[#allocation10 + $0xc0] sm:$0xff]  }
 0x1f2   : > { %1929 = vmatprep.subr.bf16.mxu1 %v3135_v40  ;;  %v3203_v39 = vld [vmem:[#allocation10 + $0x80] sm:$0xff]   ;;  %v1120_v40 = vld [vmem:[%s3834_s4] sm:$0xf] }
 0x1f4   : > { %1887 = vmatpush2.bf16.msra.mxu0 %v3130_v41  ;;  %v1129_v41 = vrot.slane %v1120_v40, %v958_v13 }
 0x1f5   : > { %1930 = vmatpush2.bf16.msra.mxu1 %v3133_v42  ;;  %1888 = vmatprep.subr.bf16.mxu0 %v3138_v43  ;;  %v1125_v42 = vrot.slane %v1120_v40, %v954_v16 }
 0x1f6   : > { %1931 = vmatprep.subr.bf16.mxu1 %v3141_v44 }
 0x1f8   : > { %1889 = vmatpush2.bf16.msra.mxu0 %v3136_v45 }
 0x1f9   : > { %1932 = vmatpush2.bf16.msra.mxu1 %v3139_v46  ;;  %1890 = vmatprep.subr.bf16.mxu0 %v3144_v47 }
 0x1fa   : > { %1933 = vmatprep.subr.bf16.mxu1 %v3147_v48 }
 0x1fc   : > { %1891 = vmatpush2.bf16.msra.mxu0 %v3142_v49 }
 0x1fd   : > { %1934 = vmatpush2.bf16.msra.mxu1 %v3145_v50  ;;  %1892 = vmatprep.subr.bf16.mxu0 %v3150_v51 }
 0x1fe   : > { %1935 = vmatprep.subr.bf16.mxu1 %v3153_v52 }
 0x200   : > { %1893 = vmatpush2.bf16.msra.mxu0 %v3148_v53 }
 0x201   : > { %1936 = vmatpush2.bf16.msra.mxu1 %v3151_v54  ;;  %1894 = vmatprep.subr.bf16.mxu0 %v3156_v55 }
 0x202   : > { %1937 = vmatprep.subr.bf16.mxu1 %v3159_v56 }
 0x204   : > { %1895 = vmatpush2.bf16.msra.mxu0 %v3154_v57 }
 0x205   : > { %1938 = vmatpush2.bf16.msra.mxu1 %v3157_v58  ;;  %1896 = vmatprep.subr.bf16.mxu0 %v3162_v59 }
 0x206   : > { %1939 = vmatprep.subr.bf16.mxu1 %v3165_v60 }
 0x208   : > { %1897 = vmatpush2.bf16.msra.mxu0 %v3160_v61 }
 0x209   : > { %1940 = vmatpush2.bf16.msra.mxu1 %v3163_v0  ;;  %1898 = vmatprep.subr.bf16.mxu0 %v3168_v1  ;;  %v1137_v1 = vrot.slane %v1120_v40, %v966_v15 }
 0x20a   : > { %1941 = vmatprep.subr.bf16.mxu1 %v3171_v2  ;;  %v1133_v2 = vrot.slane %v1120_v40, %v962_v18 }
 0x20c   : > { %1899 = vmatpush2.bf16.msra.mxu0 %v3166_v3 }
 0x20d   : > { %1942 = vmatpush2.bf16.msra.mxu1 %v3169_v4  ;;  %2725 = vmatprep.subr.bf16.mxu0 %v3172_v5 }
 0x20e   : > { %2747 = vmatprep.subr.bf16.mxu1 %v3188_v21 }
 0x20f   : > { %1901 = vmatmul.mubr.bf16.vlgmr.msra.gmra.mxu0 %v3767_v62  ;;  %v3189_v62 = vld [vmem:[#allocation10 + $0xb8] sm:$0xff]  }
 0x210   : > { %1944 = vmatmul.mubr.bf16.vlgmr.msra.gmra.mxu1 %v3769_v63  ;;  %2726 = vmatpush3.bf16.msra.mxu0 %v3173_v6  ;;  %v3183_v63 = vld [vmem:[#allocation10 + $0x10] sm:$0xff]  }
 0x211   : > { %2727 = vmatprep.subr.bf16.mxu0 %v3174_v8  ;;  %2748 = vmatpush3.bf16.msra.mxu1 %v3189_v62 }
 0x212   : > { %2749 = vmatprep.subr.bf16.mxu1 %v3190_v22 }
 0x214   : > { %2728 = vmatpush3.bf16.msra.mxu0 %v3175_v9 }
 0x215   : > { %2729 = vmatprep.subr.bf16.mxu0 %v3176_v10  ;;  %2750 = vmatpush3.bf16.msra.mxu1 %v3191_v24 }
 0x216   : > { %2751 = vmatprep.subr.bf16.mxu1 %v3192_v25 }
 0x218   : > { %2730 = vmatpush3.bf16.msra.mxu0 %v3177_v11 }
 0x219   : > { %2731 = vmatprep.subr.bf16.mxu0 %v3178_v12  ;;  %2752 = vmatpush3.bf16.msra.mxu1 %v3193_v28 }
 0x21a   : > { %2753 = vmatprep.subr.bf16.mxu1 %v3194_v29  ;;  %v2683_v29 = vld [vmem:[%s3836_s6] ss:$0 sm:$0xff] }
 0x21c   : > { %2732 = vmatpush3.bf16.msra.mxu0 %v3179_v14 }
 0x21d   : > { %2733 = vmatprep.subr.bf16.mxu0 %v3180_v17  ;;  %2754 = vmatpush3.bf16.msra.mxu1 %v3195_v31 }
 0x21e   : > { %2755 = vmatprep.subr.bf16.mxu1 %v3196_v32 }
 0x220   : > { %2734 = vmatpush3.bf16.msra.mxu0 %v3181_v19 }
 0x221   : > { %2735 = vmatprep.subr.bf16.mxu0 %v3182_v20  ;;  %2756 = vmatpush3.bf16.msra.mxu1 %v3197_v33 }
 0x222   : > { %2757 = vmatprep.subr.bf16.mxu1 %v3198_v34 }
 0x224   : > { %2736 = vmatpush3.bf16.msra.mxu0 %v3183_v63 }
 0x225   : > { %2737 = vmatprep.subr.bf16.mxu0 %v3184_v23  ;;  %2758 = vmatpush3.bf16.msra.mxu1 %v3199_v35 }
 0x226   : > { %2759 = vmatprep.subr.bf16.mxu1 %v3200_v36 }
 0x228   : > { %2738 = vmatpush3.bf16.msra.mxu0 %v3185_v26 }
 0x229   : > { %2739 = vmatprep.subr.bf16.mxu0 %v3186_v27  ;;  %2760 = vmatpush3.bf16.msra.mxu1 %v3201_v37 }
 0x22a   : > { %2761 = vmatprep.subr.bf16.mxu1 %v3202_v38 }
 0x22c   : > { %2740 = vmatpush3.bf16.msra.mxu0 %v3187_v30 }
 0x22d   : > { %2762 = vmatpush3.bf16.msra.mxu1 %v3203_v39 }
 0x28f   : > { %v1816_v43 = vpop.f32.mrf.mxu0 }
 0x290   : > { %v1859_v44 = vpop.f32.mrf.mxu1  ;;  %v1817_v48 = vadd.f32 %v1816_v43, %v1125_v42 }
 0x291   : > { %v1818_v45 = vpop.f32.mrf.mxu0 }
 0x292   : > { %v1861_v46 = vpop.f32.mrf.mxu1  ;;  %v1819_v47 = vadd.f32 %v1818_v45, %v1129_v41  ;;  %v1860_v56 = vadd.f32 %v1859_v44, %v1817_v48 }
 0x293   : > { %v1820_v49 = vpop.f32.mrf.mxu0 }
 0x294   : > { %v1863_v50 = vpop.f32.mrf.mxu1  ;;  %v1821_v51 = vadd.f32 %v1820_v49, %v1125_v42  ;;  %v1862_v53 = vadd.f32 %v1861_v46, %v1819_v47  ;;  %v1954_v16 = vmax.f32 %v1860_v56, 0.0 }
 0x295   : > { %v1822_v52 = vpop.f32.mrf.mxu0 }
 0x296   : > { %v1864_v54 = vadd.f32 %v1863_v50, %v1821_v51  ;;  %v1823_v55 = vadd.f32 %v1822_v52, %v1129_v41  ;;  %v1865_v57 = vpop.f32.mrf.mxu1  ;;  %v1955_v59 = vmax.f32 %v1862_v53, 0.0 }
 0x298   : > { %v1866_v58 = vadd.f32 %v1865_v57, %v1823_v55  ;;  %v1958_v13 = vmax.f32 %v1864_v54, 0.0 }
 0x29a   : > { %v1959_v60 = vmax.f32 %v1866_v58, 0.0  ;;  %v1962_v0 = vpack.c.bf16 %v1958_v13, %v1954_v16 }
 0x29c   : > { %v1963_v61 = vpack.c.bf16 %v1959_v60, %v1955_v59 }
 0x29e   : > { %2261 = vmatprep.mubr.bf16.mxu0 %v1963_v61 }
 0x29f   : > { %2262 = vmatmul.mubr.bf16.vlgmr.msra.gmra.mxu0 %v1962_v0 }
 0x2cf   : > { %v1902_v3 = vpop.f32.mrf.mxu0 }
 0x2d0   : > { %v1945_v4 = vpop.f32.mrf.mxu1  ;;  %v1903_v9 = vadd.f32 %v1902_v3, %v1133_v2 }
 0x2d1   : > { %v1904_v5 = vpop.f32.mrf.mxu0 }
 0x2d2   : > { %v1947_v6 = vpop.f32.mrf.mxu1  ;;  %v1905_v8 = vadd.f32 %v1904_v5, %v1137_v1  ;;  %v1946_v21 = vadd.f32 %v1945_v4, %v1903_v9 }
 0x2d3   : > { %v1906_v10 = vpop.f32.mrf.mxu0 }
 0x2d4   : > { %v1949_v11 = vpop.f32.mrf.mxu1  ;;  %v1907_v12 = vadd.f32 %v1906_v10, %v1133_v2  ;;  %v1948_v17 = vadd.f32 %v1947_v6, %v1905_v8  ;;  %v1956_v18 = vmax.f32 %v1946_v21, 0.0 }
 0x2d5   : > { %v1908_v14 = vpop.f32.mrf.mxu0 }
 0x2d6   : > { %v1950_v19 = vadd.f32 %v1949_v11, %v1907_v12  ;;  %v1909_v20 = vadd.f32 %v1908_v14, %v1137_v1  ;;  %v1951_v62 = vpop.f32.mrf.mxu1  ;;  %v1957_v63 = vmax.f32 %v1948_v17, 0.0 }
 0x2d8   : > { %v1952_v22 = vadd.f32 %v1951_v62, %v1909_v20  ;;  %v1960_v15 = vmax.f32 %v1950_v19, 0.0 }
 0x2da   : > { %v1961_v7 = vmax.f32 %v1952_v22, 0.0  ;;  %v1964_v24 = vpack.c.bf16 %v1960_v15, %v1956_v18 }
 0x2dc   : > { %v1965_v23 = vpack.c.bf16 %v1961_v7, %v1957_v63 }
 0x2de   : > { %2302 = vmatprep.mubr.bf16.mxu1 %v1965_v23 }
 0x2df   : > { %2303 = vmatmul.mubr.bf16.vlgmr.msra.gmra.mxu1 %v1964_v24 }
 0x35f   : > { %v2741_v25 = vpop.f32.mrf.mxu0 }
 0x361   : > { %v2742_v26 = vpop.f32.mrf.mxu0 }
 0x362   : > { %v2743_v28 = vadd.f32 %v2742_v26, %v2741_v25 }
 0x363   : > { %v2744_v27 = vpop.f32.mrf.mxu0 }
 0x364   : > { %v2264_v33 = vadd.f32 %v2743_v28, %v2683_v29 }
 0x365   : > { %v2745_v30 = vpop.f32.mrf.mxu0 }
 0x366   : > { %v2746_v34 = vadd.f32 %v2745_v30, %v2744_v27 }
 0x368   : > { %v2267_v39 = vadd.f32 %v2746_v34, %v2683_v29 }
 0x39f   : > { %v2763_v31 = vpop.f32.mrf.mxu1 }
 0x3a1   : > { %v2764_v32 = vpop.f32.mrf.mxu1 }
 0x3a2   : > { %v2765_v35 = vadd.f32 %v2764_v32, %v2763_v31 }
 0x3a3   : > { %v2766_v36 = vpop.f32.mrf.mxu1 }
 0x3a4   : > { %v2305_v37 = vadd.f32 %v2765_v35, %v2264_v33 }
 0x3a5   : > { %v2767_v38 = vpop.f32.mrf.mxu1 }
 0x3a6   : > { %2311 = vst [vmem:[#allocation12] sm:$0xff] %v2305_v37  ;;  %v2768_v40 = vadd.f32 %v2767_v38, %v2766_v36 }
 0x3a8   : > { %v2308_v41 = vadd.f32 %v2768_v40, %v2267_v39 }
 0x3aa   : > { %2312 = vst [vmem:[#allocation12 + $0x8] sm:$0xff] %v2308_v41 }
 0x3ab PF: > { %p2817_p9 = scmp.eq.s32.totalorder %s3549_s11, 3  ;;  %s3469_s24 = smov [#allocation11]  }
 0x3ac   : > { %s2323_s21 = sshll.u32 %s3469_s24, 4  ;;  %s2324_s21 = int_to_ptr.vmem [resolvable:$true] %s2323_s21 }
 0x3ad   : > { %s3338_s17 = scalar_lea.vmem %s2324_s21, 1024  ;;  %p3345_p0 = scmp.lt.s32.totalorder %s2324_s21, %s2324_s21 }
 0x3ae   : > { %p3339_p4 = scmp.ne.s32.totalorder %s2324_s21, %s3338_s17  ;;  %p3346_p1 = scmp.lt.s32.totalorder %s3338_s17, %s3338_s17 }
 0x3b0   : > { %p3340_p13 = pnand %p3339_p4, %p2817_p9  ;;  %p3347_p5 = por %p3346_p1, %p3345_p0 }
 0x3b2   : > { %p3341_p11 = pneg %p3340_p13 }
 0x3b4   : > { %p3348_p10 = pnand %p3347_p5, %p3341_p11 }
 0x3b6   : > { %3351 = shalt.err (!%p3348_p10)
}
 0x3b7   : > { %s3470_s19 = smov 512   ;;  %s3471_s12 = smov 32  }
 0x3b8   : > { %s3874_s16 = sld [smem:[#allocation26_spill]]  ;;  %s3472_s25 = smov [#allocation12]  }
 0x3b9   : > { %s2339_s23 = sshll.u32 %s3472_s25, 4  ;;  %s2340_s23 = int_to_ptr.vmem [resolvable:$true] %s2339_s23 }
 0x3ba   : > { %s3362_s22 = scalar_lea.vmem %s2340_s23, 256  ;;  %p3369_p8 = scmp.lt.s32.totalorder %s2340_s23, %s2340_s23 }
 0x3bb   : > { %p3363_p12 = scmp.ne.s32.totalorder %s2340_s23, %s3362_s22  ;;  %p3370_p2 = scmp.lt.s32.totalorder %s3362_s22, %s3362_s22 }
 0x3bd   : > { %p3364_p3 = pnand %p3363_p12, %p2817_p9  ;;  %p3371_p7 = por %p3370_p2, %p3369_p8 }
 0x3be   : > { %2786 = dma.vmem_to_hbm [thread:$0]  (%p2817_p9), %s2324_s21, 1024, %s3874_s16, [#allocation4], %s3470_s19, %s3470_s19, %s3471_s12  }
 0x3bf   : > { %p3365_p6 = pneg %p3364_p3 }
 0x3c1   : > { %p3372_p4 = pnand %p3371_p7, %p3365_p6 }
 0x3c3   : > { %3375 = shalt.err (!%p3372_p4)
}
 0x3c4   : > { %s3473_s3 = smov 128   ;;  %s3474_s27 = smov 8  }
 0x3c5   : > { %s3875_s7 = sld [smem:[#allocation27_spill]] }
 0x3cb   : > { %2788 = dma.vmem_to_hbm [thread:$0]  (%p2817_p9), %s2340_s23, 256, %s3875_s7, [#allocation13], %s3473_s3, %s3473_s3, %s3474_s27  }
 0x3cc   : > { %3427 = dma.done.wait (%p2817_p9), [#allocation4], 1024  }
 0x3cd   : > { %3429 = vsyncadd (%p2817_p9), [#allocation4], 4294966272 }
 0x3ce   : > { %3431 = dma.done.wait (%p2817_p9), [#allocation13], 256  }
 0x3cf   : > { %3433 = vsyncadd (%p2817_p9), [#allocation13], 4294967040 }
 0x3d0 PF: > { %s3876_s18 = sld [smem:[#allocation20_spill]]  ;;  %s3878_s27 = smov %s3440_s28 }
 0x3d1   : > { %s3877_s5 = sld [smem:[#allocation21_spill]]  ;;  %s3879_s28 = smov %s3444_s29 }
 0x3d2   : > { %s3880_s29 = smov %s3644_s0  ;;  %s3881_s30 = smov %s3452_s9 }
 0x3d6   : > { %s28_s10 = sadd.s32 1, %s3876_s18  }
 0x3d7   : > { %p25_p13 = scmp.ge.s32.totalorder %s28_s10, 6   ;;  %s3882_s9 = smov %s3877_s5 }
 0x3d9   :  { %27 = sbr.rel (!%p25_p13) target bundleno = 16 (0x10), region = 128 }
 0x3de   :  { %2359 = vsyncpa [#allocation3], 1 }
 0x3df   :  { %2361 = vsyncpa [#allocation3 + $0x1], 1 }
 0x3e0   :  { %2362 = vsyncpa [#allocation6], 1 }
 0x3e1   :  { %2364 = vsyncpa [#allocation6 + $0x1], 1 }
 0x3e2   :  { %2365 = vsyncpa [#allocation9], 1 }
 0x3e3   :  { %2366 = vsyncpa [#allocation4], 1 }
 0x3e4   :  { %2368 = vsyncpa [#allocation4 + $0x1], 1 }
 0x3e5   :  { %2369 = vsyncpa [#allocation13], 1 }

</bundles_post_ra>
